<compile_context>
chip_gen: v7x
topology: tpu7x:2x2x1
jax: 0.10.0
libtpu: 0.0.40
codegen_flags: <defaults>
</compile_context>

<pallas_src>
import jax
import jax.numpy as jnp
from jax.experimental import pallas as pl
from jax.experimental.pallas import tpu as pltpu

_MiB = 1024 * 1024
_G = 128                          # lane width / batch-group size of the grouped path
_GROUPED_WBLOCK_MAX = 16 * _MiB   # largest block-diagonal weight kept VMEM-resident


def _round_up(a, b):
    return (a + b - 1) // b * b


def _vmem_capacity_bytes():
    """Per-core VMEM capacity; conservative v7x-safe default if the query fails."""
    try:
        return int(pltpu.get_tpu_info().vmem_capacity_bytes)
    except Exception:  # pragma: no cover - off-TPU / older jax
        return 64 * _MiB


def _pick_block_rows(total_rows, row_bytes, buf_budget_bytes, row_cap=None):
    """Rows per grid step: as large as the double-buffered VMEM budget allows,
    sublane (8) aligned, and split into >= 2 steps for non-trivial sizes so both
    v7x TensorCores get a share of the 'parallel' batch axis."""
    blk = max(1, buf_budget_bytes // max(1, row_bytes))
    if row_cap is not None:
        blk = min(blk, max(1, int(row_cap)))
    if blk >= total_rows:
        if total_rows < 16:
            return total_rows              # single full block (full dim => legal)
        blk = pl.cdiv(total_rows, 2)       # keep >= 2 grid steps (megacore on v7x)
    blk = max(8, (blk // 8) * 8)           # partial blocks must be 8-row aligned
    return min(blk, total_rows)


def _svm_kernel(x_ref, w_ref, b_ref, o_ref):
    # x_ref: (m, K) streamed tile, w_ref: (K, N) resident, b_ref: (1,) SMEM scalar.
    # lhs contracts its lane axis, rhs contracts its sublane axis -> MXU-native,
    # no hidden per-tile transpose.  f32 accumulation on the MXU.
    h = jnp.dot(x_ref[...].astype(w_ref.dtype), w_ref[...],
                preferred_element_type=jnp.float32)
    o_ref[...] = (h + b_ref[0]).astype(o_ref.dtype)
    # Note: stale rows of a partial last x tile only feed output rows that are
    # masked on the output writeback (each output row depends only on its own
    # input row), so they never contaminate valid results.


def linear_svm_forward(x, weight, bias, *, grouped=None, tb_max_rows=None):
    """LINEAR_SVM.forward: x (B, nz), weight (1, nz), bias (1,) -> (B, 1)."""
    B, nz = x.shape
    x_isz = jnp.dtype(x.dtype).itemsize
    out_dtype = jnp.promote_types(x.dtype, weight.dtype)   # keep f32 params in f32
    out_isz = jnp.dtype(out_dtype).itemsize
    w_flat = weight.reshape(-1).astype(out_dtype)
    bias1 = bias.reshape(1).astype(out_dtype)

    # ---- per-generation VMEM sizing ---------------------------------------
    cap = _vmem_capacity_bytes()                       # 128 MiB v5e/v6e, 64 MiB v7x
    vmem_limit = max(32 * _MiB, min(cap - 16 * _MiB, 112 * _MiB))

    wblock_bytes = _G * nz * _G * out_isz              # grouped-path resident weight
    if grouped is None:
        # Grouped path only when its resident weight is small and padding the batch
        # to a multiple of 128 is either unnecessary or cheap (tiny batches).
        grouped = (wblock_bytes <= _GROUPED_WBLOCK_MAX
                   and (B % _G == 0 or B <= (1 << 16)))

    if grouped:
        # ---------------- grouped / lane-dense path (small nz) --------------
        Bp = _round_up(B, _G)
        # Pad copies x only when B isn't already a multiple of 128.
        xp = x if Bp == B else jnp.pad(x, ((0, Bp - B), (0, 0)))
        K = _G * nz
        xr = xp.reshape(Bp // _G, K)                   # free: same row-major bytes
        # Block-diagonal weight: W[g*nz + k, g] = w[k]  =>  out[i, g] = y[i*128 + g].
        eye = jnp.eye(_G, dtype=out_dtype)
        w_block = (eye[:, None, :] * w_flat[None, :, None]).reshape(K, _G)

        M = Bp // _G
        buf_budget = min(32 * _MiB,
                         max(2 * _MiB, (vmem_limit - 2 * wblock_bytes - 6 * _MiB) // 2))
        row_cap = None if tb_max_rows is None else max(1, tb_max_rows // _G)
        m_blk = _pick_block_rows(M, K * x_isz, buf_budget, row_cap)
        grid = (pl.cdiv(M, m_blk),)

        out = pl.pallas_call(
            _svm_kernel,
            out_shape=jax.ShapeDtypeStruct((M, _G), out_dtype),
            grid_spec=pltpu.PrefetchScalarGridSpec(
                num_scalar_prefetch=0,
                grid=grid,
                in_specs=[
                    pl.BlockSpec((m_blk, K), lambda i: (i, 0)),        # streamed x
                    pl.BlockSpec((K, _G), lambda i: (0, 0)),           # resident W
                    pl.BlockSpec(memory_space=pltpu.MemorySpace.SMEM),  # bias scalar
                ],
                out_specs=pl.BlockSpec((m_blk, _G), lambda i: (i, 0)),  # lane-dense
            ),
            compiler_params=pltpu.CompilerParams(
                dimension_semantics=("parallel",),
                vmem_limit_bytes=vmem_limit,
            ),
            cost_estimate=pl.CostEstimate(
                flops=2 * B * nz,
                transcendentals=0,
                bytes_accessed=Bp * nz * x_isz + wblock_bytes + Bp * out_isz,
            ),
        )(xr, w_block, bias1)
        return out.reshape(Bp, 1)[:B]

    # ------------------- fallback path (large nz) ---------------------------
    nzp = _round_up(nz, 128)                           # lane-padded VMEM tile width
    w_col = w_flat.reshape(nz, 1)
    w_res = 2 * _round_up(nz, 8) * 128 * out_isz       # padded resident weight bufs
    buf_budget = min(32 * _MiB,
                     max(2 * _MiB, (vmem_limit - w_res - 6 * _MiB) // 2))
    m_blk = _pick_block_rows(B, nzp * x_isz, buf_budget, tb_max_rows)
    grid = (pl.cdiv(B, m_blk),)

    out = pl.pallas_call(
        _svm_kernel,
        out_shape=jax.ShapeDtypeStruct((B, 1), out_dtype),
        grid_spec=pltpu.PrefetchScalarGridSpec(
            num_scalar_prefetch=0,
            grid=grid,
            in_specs=[
                pl.BlockSpec((m_blk, nz), lambda i: (i, 0)),           # streamed x
                pl.BlockSpec((nz, 1), lambda i: (0, 0)),               # resident W^T
                pl.BlockSpec(memory_space=pltpu.MemorySpace.SMEM),     # bias scalar
            ],
            out_specs=pl.BlockSpec((m_blk, 1), lambda i: (i, 0)),
        ),
        compiler_params=pltpu.CompilerParams(
            dimension_semantics=("parallel",),
            vmem_limit_bytes=vmem_limit,
        ),
        cost_estimate=pl.CostEstimate(
            flops=2 * B * nz,
            transcendentals=0,
            bytes_accessed=B * nz * x_isz + nz * out_isz + B * out_isz,
        ),
    )(x, w_col, bias1)
    return out


if __name__ == "__main__":
    key = jax.random.PRNGKey(0)
    kw, kb, k1, k2, k3, kw3, kb3 = jax.random.split(key, 7)

    # Shapes consistent with the module: nz = latent dim, small batches of latents.
    nz = 32
    bound = 1.0 / jnp.sqrt(jnp.float32(nz))
    weight = jax.random.uniform(kw, (1, nz), jnp.float32, -bound, bound)
    bias = jax.random.uniform(kb, (1,), jnp.float32, -bound, bound)

    def ref_fwd(xx, ww, bb):
        return xx @ ww.T + bb[None, :]

    # 1) Tiny batch (B < 128): grouped path, single grid step.
    x1 = jax.random.normal(k1, (8, nz), jnp.float32)
    o1 = jax.block_until_ready(linear_svm_forward(x1, weight, bias))
    assert o1.shape == (8, 1)
    assert jnp.allclose(o1, ref_fwd(x1, weight, bias), atol=1e-4, rtol=1e-5)

    # 2) Grouped path, multi-step grid with a partial last block
    #    (B=1900 -> padded to 1920 -> 15 grouped rows, 8-row tiles -> 2 steps).
    x2 = jax.random.normal(k2, (1900, nz), jnp.float32)
    o2 = jax.block_until_ready(
        linear_svm_forward(x2, weight, bias, tb_max_rows=1024))
    assert o2.shape == (1900, 1)
    assert jnp.allclose(o2, ref_fwd(x2, weight, bias), atol=1e-4, rtol=1e-5)

    # 3) Large-nz auto-dispatch to the fallback kernel, 3 grid steps, partial tail.
    nz3 = 384
    bound3 = 1.0 / jnp.sqrt(jnp.float32(nz3))
    weight3 = jax.random.uniform(kw3, (1, nz3), jnp.float32, -bound3, bound3)
    bias3 = jax.random.uniform(kb3, (1,), jnp.float32, -bound3, bound3)
    x3 = jax.random.normal(k3, (300, nz3), jnp.float32)
    o3 = jax.block_until_ready(
        linear_svm_forward(x3, weight3, bias3, tb_max_rows=128))
    assert o3.shape == (300, 1)
    assert jnp.allclose(o3, ref_fwd(x3, weight3, bias3), atol=1e-4, rtol=1e-5)

    print("KERNEL_OK")
</pallas_src>

<mosaic_0001>
module attributes {stable_mosaic.version = 11 : i64} {
  func.func @_svm_kernel(%arg0: i32, %arg1: memref<1x4096xf32, #tpu.memory_space<vmem>>, %arg2: memref<4096x128xf32, #tpu.memory_space<vmem>>, %arg3: memref<1xf32, #tpu.memory_space<smem>>, %arg4: memref<1x128xf32, #tpu.memory_space<vmem>>) attributes {dimension_semantics = [#tpu.dimension_semantics<parallel>], iteration_bounds = array<i64: 1>, scalar_prefetch = 0 : i64, scratch_operands = 0 : i64, tpu.core_type = #tpu.core_type<tc>, window_params = [{transform_indices = @transform_0, window_bounds = array<i64: 1, 4096>}, {pipeline_mode = #tpu.pipeline_mode<synchronous>, transform_indices = @transform_1, window_bounds = array<i64: 4096, 128>}, {transform_indices = @transform_2, window_bounds = array<i64: 1>}, {transform_indices = @transform_3, window_bounds = array<i64: 1, 128>}]} {
    %c0 = arith.constant 0 : index
    %c0_0 = arith.constant 0 : index
    %0 = vector.load %arg1[%c0, %c0_0] : memref<1x4096xf32, #tpu.memory_space<vmem>>, vector<1x4096xf32>
    %c0_1 = arith.constant 0 : index
    %c0_2 = arith.constant 0 : index
    %1 = vector.load %arg2[%c0_1, %c0_2] : memref<4096x128xf32, #tpu.memory_space<vmem>>, vector<4096x128xf32>
    %cst = arith.constant dense<0.000000e+00> : vector<1x128xf32>
    %2 = tpu.matmul %0, %1, %cst {dimension_numbers = #tpu.dot_dimension_numbers<[1], [0], [0], [1], [0, 0, 1, 1], [], []>} : vector<1x4096xf32>, vector<4096x128xf32>, vector<1x128xf32> -> vector<1x128xf32>
    %c0_3 = arith.constant 0 : index
    %3 = memref.load %arg3[%c0_3] : memref<1xf32, #tpu.memory_space<smem>>
    %4 = vector.broadcast %3 : f32 to vector<1x128xf32>
    %5 = arith.addf %2, %4 : vector<1x128xf32>
    %c0_4 = arith.constant 0 : index
    %c0_5 = arith.constant 0 : index
    %6 = vector.load %arg4[%c0_4, %c0_5] : memref<1x128xf32, #tpu.memory_space<vmem>>, vector<1x128xf32>
    tpu.vector_store %arg4[%c0_4, %c0_5], %5 {strides = array<i32>} : memref<1x128xf32, #tpu.memory_space<vmem>>, vector<1x128xf32>,
    return
  }
  func.func @transform_0(%arg0: i32) -> (i32, i32) {
    %c0_i32 = arith.constant 0 : i32
    %c0_i32_0 = arith.constant 0 : i32
    return %arg0, %c0_i32 : i32, i32
  }
  func.func @transform_1(%arg0: i32) -> (i32, i32) {
    %c0_i32 = arith.constant 0 : i32
    %c0_i32_0 = arith.constant 0 : i32
    %c0_i32_1 = arith.constant 0 : i32
    return %c0_i32, %c0_i32_0 : i32, i32
  }
  func.func @transform_2(%arg0: i32) -> i32 {
    %c0_i32 = arith.constant 0 : i32
    %c0_i32_0 = arith.constant 0 : i32
    return %c0_i32 : i32
  }
  func.func @transform_3(%arg0: i32) -> (i32, i32) {
    %c0_i32 = arith.constant 0 : i32
    %c0_i32_0 = arith.constant 0 : i32
    return %arg0, %c0_i32 : i32, i32
  }
}

</mosaic_0001>

<bundles_post_ra>
// kernel: tpu_custom_call.1
= control target key start
LH: loop header
LB: loop body
LE: loop exit
PB: predicated region body
PF: predicated region fallthrough
CT: control target
= control target key end

     0   :  { %9 = vsyncpa [#allocation4], 0  ;;  %s3179_s0 = inlined_call_operand.hbm [shape: f32[1,4096], index: 0, kind: input, shape index: {}]   ;;  %s3180_s1 = inlined_call_operand.hbm [shape: f32[4096,128], index: 1, kind: input, shape index: {}]   ;;  %s3181_s2 = inlined_call_operand.<no memory space> [shape: f32[1], index: 2, kind: input, shape index: {}]   ;;  %s3182_s3 = inlined_call_operand.hbm [shape: f32[1,128], index: 3, kind: output, shape index: {}]  }
   0x1   :  { %10 = vsyncpa [#allocation7], 0 }
   0x2   :  { %11 = vsyncpa [#allocation5], 0  ;;  %s3010_s12 = smov [#allocation3]   ;;  %s3011_s14 = smov [#allocation6]  }
   0x3   :  { %s18_s13 = sshll.u32 %s3010_s12, 4  ;;  %s27_s15 = sshll.u32 %s3011_s14, 4  ;;  %s19_s13 = int_to_ptr.vmem [resolvable:$true] %s18_s13  ;;  %s3035_s15 = int_to_ptr.vmem [resolvable:$true] %s27_s15 }
   0x4   :  { %s2938_s18 = scalar_lea.hbm %s3179_s0, 512 }
   0x5   :  { %p2939_p0 = scmp.ne.s32.totalorder %s3179_s0, %s2938_s18  ;;  %p2942_p1 = scmp.lt.u32.totalorder %s2938_s18, %s3179_s0 }
   0x7   :  { %p2944_p2 = pnand %p2942_p1, %p2939_p0 }
   0x9   :  { %2947 = shalt.err (!%p2944_p2)
}
   0xa   :  { %s2948_s23 = scalar_lea.vmem %s19_s13, 512  ;;  %p2953_p4 = scmp.lt.s32.totalorder %s19_s13, %s19_s13 }
   0xb   :  { %p2949_p3 = scmp.ne.s32.totalorder %s19_s13, %s2948_s23  ;;  %p2954_p5 = scmp.lt.s32.totalorder %s2948_s23, %s2948_s23 }
   0xd   :  { %p2955_p6 = por %p2954_p5, %p2953_p4 }
   0xf   :  { %p2956_p7 = pnand %p2955_p6, %p2949_p3 }
  0x11   :  { %2959 = shalt.err (!%p2956_p7)
}
  0x12   :  { %21 = dma.hbm_to_vmem [thread:$0]  %s3179_s0, 512, %s19_s13, [#allocation4]  }
  0x13   :  { %s2960_s28 = scalar_lea.hbm %s3180_s1, 65536 }
  0x14   :  { %p2961_p8 = scmp.ne.s32.totalorder %s3180_s1, %s2960_s28  ;;  %p2964_p9 = scmp.lt.u32.totalorder %s2960_s28, %s3180_s1 }
  0x16   :  { %p2966_p10 = pnand %p2964_p9, %p2961_p8 }
  0x18   :  { %2969 = shalt.err (!%p2966_p10)
}
  0x19   :  { %s2970_s6 = scalar_lea.vmem %s3035_s15, 65536  ;;  %p2975_p12 = scmp.lt.s32.totalorder %s3035_s15, %s3035_s15 }
  0x1a   :  { %p2971_p11 = scmp.ne.s32.totalorder %s3035_s15, %s2970_s6  ;;  %p2976_p13 = scmp.lt.s32.totalorder %s2970_s6, %s2970_s6 }
  0x1c   :  { %p2977_p0 = por %p2976_p13, %p2975_p12 }
  0x1e   :  { %p2978_p1 = pnand %p2977_p0, %p2971_p11 }
  0x20   :  { %2981 = shalt.err (!%p2978_p1)
}
  0x21   :  { %s3012_s0 = smov 128   ;;  %s3013_s7 = smov 8  }
  0x22   :  { %33 = dma.hbm_to_vmem [thread:$0]  %s3180_s1, 65536, %s3035_s15, [#allocation7], %s3012_s0, %s3012_s0, %s3013_s7  }
  0x23   :  { %3004 = dma.done.wait [#allocation4], 512  }
  0x24   :  { %3005 = vsyncadd [#allocation4], 4294966784 }
  0x25   :  { %3006 = dma.done.wait [#allocation7], 65536  }
  0x26   :  { %3007 = vsyncadd [#allocation7], 4294901760  ;;  %v62_v0 = vld [vmem:[#allocation6 + $0x80] sm:$0xff]  ;;  %v63_v1 = vld [vmem:[#allocation6 + $0x88] sm:$0xff]  ;;  %v564_v47 = vlaneseq }
  0x27   :  { %v46_v2 = vld [vmem:[#allocation6] sm:$0xff]  ;;  %v2421_v3 = vpack.c.bf16 %v63_v1, %v62_v0  ;;  %v47_v4 = vld [vmem:[#allocation6 + $0x8] sm:$0xff]  ;;  %v64_v11 = vld [vmem:[#allocation6 + $0x90] sm:$0xff] }
  0x28   :  { %v94_v5 = vld [vmem:[#allocation6 + $0x180] sm:$0xff]  ;;  %v95_v6 = vld [vmem:[#allocation6 + $0x188] sm:$0xff]  ;;  %v2423_v7 = vpack.c.bf16 %v47_v4, %v46_v2  ;;  %v65_v13 = vld [vmem:[#allocation6 + $0x98] sm:$0xff]  ;;  %v3066_v61 = vshrl.u32 %v564_v47, 7 }
  0x29   :  { %v2453_v8 = vpack.c.bf16 %v95_v6, %v94_v5  ;;  %v78_v9 = vld [vmem:[#allocation6 + $0x100] sm:$0xff]  ;;  %v79_v10 = vld [vmem:[#allocation6 + $0x108] sm:$0xff]  ;;  %2422 = vmatprep.subr.bf16.mxu0 %v2421_v3  ;;  %v48_v14 = vld [vmem:[#allocation6 + $0x10] sm:$0xff]  ;;  %v2425_v16 = vpack.c.bf16 %v65_v13, %v64_v11 }
  0x2a   :  { %v2455_v12 = vpack.c.bf16 %v79_v10, %v78_v9  ;;  %v49_v15 = vld [vmem:[#allocation6 + $0x18] sm:$0xff]  ;;  %2424 = vmatpush3.bf16.msra.mxu0 %v2423_v7  ;;  %v96_v18 = vld [vmem:[#allocation6 + $0x190] sm:$0xff]  ;;  %v66_v23 = vld [vmem:[#allocation6 + $0xa0] sm:$0xff]  ;;  %v3069_v10 = vsub.s32 1, %v3066_v61  ;;  %v3072_v11 = vsub.s32 3, %v3066_v61 }
  0x2b   :  { %2454 = vmatprep.subr.bf16.mxu1 %v2453_v8  ;;  %v2427_v17 = vpack.c.bf16 %v49_v15, %v48_v14  ;;  %v97_v19 = vld [vmem:[#allocation6 + $0x198] sm:$0xff]  ;;  %v80_v20 = vld [vmem:[#allocation6 + $0x110] sm:$0xff]  ;;  %v67_v24 = vld [vmem:[#allocation6 + $0xa8] sm:$0xff]  ;;  %2426 = vmatprep.subr.bf16.mxu0 %v2425_v16 }
  0x2c   :  { %2456 = vmatpush3.bf16.msra.mxu1 %v2455_v12  ;;  %v2457_v21 = vpack.c.bf16 %v97_v19, %v96_v18  ;;  %v81_v22 = vld [vmem:[#allocation6 + $0x118] sm:$0xff]  ;;  %v2429_v26 = vpack.c.bf16 %v67_v24, %v66_v23  ;;  %v50_v27 = vld [vmem:[#allocation6 + $0x20] sm:$0xff]  ;;  %v51_v28 = vld [vmem:[#allocation6 + $0x28] sm:$0xff] }
  0x2d   :  { %v2459_v25 = vpack.c.bf16 %v81_v22, %v80_v20  ;;  %v98_v29 = vld [vmem:[#allocation6 + $0x1a0] sm:$0xff]  ;;  %v99_v30 = vld [vmem:[#allocation6 + $0x1a8] sm:$0xff]  ;;  %v2431_v33 = vpack.c.bf16 %v51_v28, %v50_v27  ;;  %v68_v35 = vld [vmem:[#allocation6 + $0xb0] sm:$0xff] }
  0x2e   :  { %2458 = vmatprep.subr.bf16.mxu1 %v2457_v21  ;;  %v82_v31 = vld [vmem:[#allocation6 + $0x120] sm:$0xff]  ;;  %v83_v32 = vld [vmem:[#allocation6 + $0x128] sm:$0xff]  ;;  %2428 = vmatpush3.bf16.msra.mxu0 %v2427_v17  ;;  %v2461_v34 = vpack.c.bf16 %v99_v30, %v98_v29  ;;  %v69_v36 = vld [vmem:[#allocation6 + $0xb8] sm:$0xff] }
  0x2f   :  { %v52_v37 = vld [vmem:[#allocation6 + $0x30] sm:$0xff]  ;;  %2430 = vmatprep.subr.bf16.mxu0 %v2429_v26  ;;  %v2463_v38 = vpack.c.bf16 %v83_v32, %v82_v31  ;;  %v2433_v39 = vpack.c.bf16 %v69_v36, %v68_v35  ;;  %v53_v40 = vld [vmem:[#allocation6 + $0x38] sm:$0xff]  ;;  %v70_v46 = vld [vmem:[#allocation6 + $0xc0] sm:$0xff] }
  0x30   :  { %2460 = vmatpush3.bf16.msra.mxu1 %v2459_v25  ;;  %v100_v41 = vld [vmem:[#allocation6 + $0x1b0] sm:$0xff]  ;;  %v101_v42 = vld [vmem:[#allocation6 + $0x1b8] sm:$0xff]  ;;  %v71_v48 = vld [vmem:[#allocation6 + $0xc8] sm:$0xff]  ;;  %v2435_v49 = vpack.c.bf16 %v53_v40, %v52_v37 }
  0x31   :  { %2462 = vmatprep.subr.bf16.mxu1 %v2461_v34  ;;  %v2465_v43 = vpack.c.bf16 %v101_v42, %v100_v41  ;;  %v84_v44 = vld [vmem:[#allocation6 + $0x130] sm:$0xff]  ;;  %v85_v45 = vld [vmem:[#allocation6 + $0x138] sm:$0xff]  ;;  %v102_v50 = vld [vmem:[#allocation6 + $0x1c0] sm:$0xff]  ;;  %v2437_v53 = vpack.c.bf16 %v71_v48, %v70_v46 }
  0x32   :  { %2432 = vmatpush3.bf16.msra.mxu0 %v2431_v33  ;;  %v103_v51 = vld [vmem:[#allocation6 + $0x1c8] sm:$0xff]  ;;  %v2467_v52 = vpack.c.bf16 %v85_v45, %v84_v44  ;;  %v54_v54 = vld [vmem:[#allocation6 + $0x40] sm:$0xff]  ;;  %v72_v59 = vld [vmem:[#allocation6 + $0xd0] sm:$0xff] }
  0x33   :  { %2434 = vmatprep.subr.bf16.mxu0 %v2433_v39  ;;  %v55_v55 = vld [vmem:[#allocation6 + $0x48] sm:$0xff]  ;;  %v86_v56 = vld [vmem:[#allocation6 + $0x140] sm:$0xff]  ;;  %v2469_v57 = vpack.c.bf16 %v103_v51, %v102_v50  ;;  %v73_v60 = vld [vmem:[#allocation6 + $0xd8] sm:$0xff]  ;;  %v3081_v39 = vsub.s32 0, %v3066_v61 }
  0x34   :  { %2464 = vmatpush3.bf16.msra.mxu1 %v2463_v38  ;;  %v87_v58 = vld [vmem:[#allocation6 + $0x148] sm:$0xff]  ;;  %v104_v62 = vld [vmem:[#allocation6 + $0x1d0] sm:$0xff]  ;;  %v105_v63 = vld [vmem:[#allocation6 + $0x1d8] sm:$0xff]  ;;  %v2439_v0 = vpack.c.bf16 %v55_v55, %v54_v54  ;;  %v2441_v2 = vpack.c.bf16 %v73_v60, %v72_v59 }
  0x35   :  { %2466 = vmatprep.subr.bf16.mxu1 %v2465_v43  ;;  %v2471_v1 = vpack.c.bf16 %v87_v58, %v86_v56  ;;  %v56_v3 = vld [vmem:[#allocation6 + $0x50] sm:$0xff]  ;;  %v57_v4 = vld [vmem:[#allocation6 + $0x58] sm:$0xff]  ;;  %v2473_v6 = vpack.c.bf16 %v105_v63, %v104_v62  ;;  %v74_v8 = vld [vmem:[#allocation6 + $0xe0] sm:$0xff]  ;;  %v3084_v43 = vsub.s32 2, %v3066_v61 }
  0x36   :  { %2436 = vmatpush3.bf16.msra.mxu0 %v2435_v49  ;;  %v88_v5 = vld [vmem:[#allocation6 + $0x150] sm:$0xff]  ;;  %v89_v7 = vld [vmem:[#allocation6 + $0x158] sm:$0xff]  ;;  %v75_v9 = vld [vmem:[#allocation6 + $0xe8] sm:$0xff]  ;;  %v2443_v14 = vpack.c.bf16 %v57_v4, %v56_v3 }
  0x37   :  { %2438 = vmatprep.subr.bf16.mxu0 %v2437_v53  ;;  %v106_v12 = vld [vmem:[#allocation6 + $0x1e0] sm:$0xff]  ;;  %v107_v13 = vld [vmem:[#allocation6 + $0x1e8] sm:$0xff]  ;;  %v2475_v16 = vpack.c.bf16 %v89_v7, %v88_v5  ;;  %v2445_v17 = vpack.c.bf16 %v75_v9, %v74_v8  ;;  %v76_v23 = vld [vmem:[#allocation6 + $0xf0] sm:$0xff]  ;;  %v3087_v53 = vsub.s32 5, %v3066_v61 }
  0x38   :  { %2468 = vmatpush3.bf16.msra.mxu1 %v2467_v52  ;;  %v58_v15 = vld [vmem:[#allocation6 + $0x60] sm:$0xff]  ;;  %v59_v18 = vld [vmem:[#allocation6 + $0x68] sm:$0xff]  ;;  %v2477_v21 = vpack.c.bf16 %v107_v13, %v106_v12  ;;  %v77_v24 = vld [vmem:[#allocation6 + $0xf8] sm:$0xff] }
  0x39   :  { %2470 = vmatprep.subr.bf16.mxu1 %v2469_v57  ;;  %v90_v19 = vld [vmem:[#allocation6 + $0x160] sm:$0xff]  ;;  %v91_v22 = vld [vmem:[#allocation6 + $0x168] sm:$0xff]  ;;  %v108_v27 = vld [vmem:[#allocation6 + $0x1f0] sm:$0xff]  ;;  %v2447_v29 = vpack.c.bf16 %v59_v18, %v58_v15  ;;  %v2449_v31 = vpack.c.bf16 %v77_v24, %v76_v23  ;;  %v3092_v57 = vsub.s32 7, %v3066_v61 }
  0x3a   :  { %2440 = vmatpush3.bf16.msra.mxu0 %v2439_v0  ;;  %v3074_v20 = vld [vmem:[#allocation3] sm:$0xff]  ;;  %v109_v28 = vld [vmem:[#allocation6 + $0x1f8] sm:$0xff]  ;;  %v2479_v30 = vpack.c.bf16 %v91_v22, %v90_v19  ;;  %v60_v32 = vld [vmem:[#allocation6 + $0x70] sm:$0xff] }
  0x3b   :  { %2442 = vmatprep.subr.bf16.mxu0 %v2441_v2  ;;  %v571_v25 = vrot.slane %v3074_v20, %v3069_v10  ;;  %v579_v26 = vrot.slane %v3074_v20, %v3072_v11  ;;  %v61_v33 = vld [vmem:[#allocation6 + $0x78] sm:$0xff]  ;;  %v92_v34 = vld [vmem:[#allocation6 + $0x170] sm:$0xff]  ;;  %v2481_v35 = vpack.c.bf16 %v109_v28, %v108_v27  ;;  %v126_v37 = vld [vmem:[#allocation6 + $0x280] sm:$0xff]  ;;  %v567_v54 = vrot.slane %v3074_v20, %v3081_v39 }
  0x3c   :  { %2472 = vmatpush3.bf16.msra.mxu1 %v2471_v1  ;;  %v93_v36 = vld [vmem:[#allocation6 + $0x178] sm:$0xff]  ;;  %v127_v38 = vld [vmem:[#allocation6 + $0x288] sm:$0xff]  ;;  %v158_v40 = vld [vmem:[#allocation6 + $0x380] sm:$0xff]  ;;  %v2451_v42 = vpack.c.bf16 %v61_v33, %v60_v32  ;;  %v575_v59 = vrot.slane %v3074_v20, %v3084_v43  ;;  %v595_v9 = vrot.slane %v3074_v20, %v3092_v57 }
  0x3d   :  { %2474 = vmatprep.subr.bf16.mxu1 %v2473_v6  ;;  %788 = vmatprep.mubr.f32.mxu0 %v571_v25  ;;  %v159_v41 = vld [vmem:[#allocation6 + $0x388] sm:$0xff]  ;;  %v2483_v44 = vpack.c.bf16 %v93_v36, %v92_v34  ;;  %v2485_v45 = vpack.c.bf16 %v127_v38, %v126_v37  ;;  %v110_v46 = vld [vmem:[#allocation6 + $0x200] sm:$0xff]  ;;  %v128_v51 = vld [vmem:[#allocation6 + $0x290] sm:$0xff]  ;;  %v587_v6 = vrot.slane %v3074_v20, %v3087_v53 }
  0x3e   :  { %2444 = vmatpush3.bf16.msra.mxu0 %v2443_v14  ;;  %858 = vmatprep.mubr.f32.mxu1 %v579_v26  ;;  %v111_v47 = vld [vmem:[#allocation6 + $0x208] sm:$0xff]  ;;  %v142_v48 = vld [vmem:[#allocation6 + $0x300] sm:$0xff]  ;;  %v2517_v49 = vpack.c.bf16 %v159_v41, %v158_v40  ;;  %v129_v52 = vld [vmem:[#allocation6 + $0x298] sm:$0xff] }
  0x3f   :  { %2446 = vmatprep.subr.bf16.mxu0 %v2445_v17  ;;  %v143_v50 = vld [vmem:[#allocation6 + $0x308] sm:$0xff]  ;;  %v160_v55 = vld [vmem:[#allocation6 + $0x390] sm:$0xff]  ;;  %v161_v56 = vld [vmem:[#allocation6 + $0x398] sm:$0xff]  ;;  %v2487_v58 = vpack.c.bf16 %v111_v47, %v110_v46  ;;  %v2489_v62 = vpack.c.bf16 %v129_v52, %v128_v51 }
  0x40   :  { %2476 = vmatpush3.bf16.msra.mxu1 %v2475_v16  ;;  %v2519_v60 = vpack.c.bf16 %v143_v50, %v142_v48  ;;  %v112_v63 = vld [vmem:[#allocation6 + $0x210] sm:$0xff]  ;;  %v113_v0 = vld [vmem:[#allocation6 + $0x218] sm:$0xff]  ;;  %v2521_v2 = vpack.c.bf16 %v161_v56, %v160_v55  ;;  %v130_v4 = vld [vmem:[#allocation6 + $0x2a0] sm:$0xff] }
  0x41   :  { %2478 = vmatprep.subr.bf16.mxu1 %v2477_v21  ;;  %v144_v1 = vld [vmem:[#allocation6 + $0x310] sm:$0xff]  ;;  %v145_v3 = vld [vmem:[#allocation6 + $0x318] sm:$0xff]  ;;  %v131_v5 = vld [vmem:[#allocation6 + $0x2a8] sm:$0xff]  ;;  %v2491_v12 = vpack.c.bf16 %v113_v0, %v112_v63 }
  0x42   :  { %2448 = vmatpush3.bf16.msra.mxu0 %v2447_v29  ;;  %v162_v7 = vld [vmem:[#allocation6 + $0x3a0] sm:$0xff]  ;;  %v163_v8 = vld [vmem:[#allocation6 + $0x3a8] sm:$0xff]  ;;  %v2523_v13 = vpack.c.bf16 %v145_v3, %v144_v1  ;;  %v2493_v14 = vpack.c.bf16 %v131_v5, %v130_v4  ;;  %v132_v21 = vld [vmem:[#allocation6 + $0x2b0] sm:$0xff] }
  0x43   :  { %2450 = vmatprep.subr.bf16.mxu0 %v2449_v31  ;;  %v114_v15 = vld [vmem:[#allocation6 + $0x220] sm:$0xff]  ;;  %v115_v16 = vld [vmem:[#allocation6 + $0x228] sm:$0xff]  ;;  %v2525_v18 = vpack.c.bf16 %v163_v8, %v162_v7  ;;  %v133_v22 = vld [vmem:[#allocation6 + $0x2b8] sm:$0xff] }
  0x44   :  { %2480 = vmatpush3.bf16.msra.mxu1 %v2479_v30  ;;  %v146_v17 = vld [vmem:[#allocation6 + $0x320] sm:$0xff]  ;;  %v147_v19 = vld [vmem:[#allocation6 + $0x328] sm:$0xff]  ;;  %v164_v23 = vld [vmem:[#allocation6 + $0x3b0] sm:$0xff]  ;;  %v2495_v25 = vpack.c.bf16 %v115_v16, %v114_v15  ;;  %v2497_v27 = vpack.c.bf16 %v133_v22, %v132_v21 }
  0x45   :  { %2482 = vmatprep.subr.bf16.mxu1 %v2481_v35  ;;  %v165_v24 = vld [vmem:[#allocation6 + $0x3b8] sm:$0xff]  ;;  %v2527_v26 = vpack.c.bf16 %v147_v19, %v146_v17  ;;  %v116_v28 = vld [vmem:[#allocation6 + $0x230] sm:$0xff]  ;;  %v134_v33 = vld [vmem:[#allocation6 + $0x2c0] sm:$0xff] }
  0x46   :  { %2452 = vmatpush3.bf16.msra.mxu0 %v2451_v42  ;;  %v117_v29 = vld [vmem:[#allocation6 + $0x238] sm:$0xff]  ;;  %v148_v30 = vld [vmem:[#allocation6 + $0x330] sm:$0xff]  ;;  %v2529_v31 = vpack.c.bf16 %v165_v24, %v164_v23  ;;  %v135_v34 = vld [vmem:[#allocation6 + $0x2c8] sm:$0xff] }
  0x47   :  { %2486 = vmatprep.subr.bf16.mxu0 %v2485_v45  ;;  %v149_v32 = vld [vmem:[#allocation6 + $0x338] sm:$0xff]  ;;  %v166_v35 = vld [vmem:[#allocation6 + $0x3c0] sm:$0xff]  ;;  %v167_v36 = vld [vmem:[#allocation6 + $0x3c8] sm:$0xff]  ;;  %v2499_v37 = vpack.c.bf16 %v117_v29, %v116_v28  ;;  %v2501_v40 = vpack.c.bf16 %v135_v34, %v134_v33 }
  0x48   :  { %2484 = vmatpush3.bf16.msra.mxu1 %v2483_v44  ;;  %v2531_v38 = vpack.c.bf16 %v149_v32, %v148_v30  ;;  %v118_v41 = vld [vmem:[#allocation6 + $0x240] sm:$0xff]  ;;  %v119_v42 = vld [vmem:[#allocation6 + $0x248] sm:$0xff]  ;;  %v2533_v45 = vpack.c.bf16 %v167_v36, %v166_v35  ;;  %v136_v47 = vld [vmem:[#allocation6 + $0x2d0] sm:$0xff] }
  0x49   :  { %2518 = vmatprep.subr.bf16.mxu1 %v2517_v49  ;;  %789 = vmatmul.mubr.f32.vlgmr.msra.gmra.mrb[0].mxu0 %v567_v54  ;;  %v150_v44 = vld [vmem:[#allocation6 + $0x340] sm:$0xff]  ;;  %v151_v46 = vld [vmem:[#allocation6 + $0x348] sm:$0xff]  ;;  %v137_v48 = vld [vmem:[#allocation6 + $0x2d8] sm:$0xff]  ;;  %v2503_v51 = vpack.c.bf16 %v119_v42, %v118_v41 }
  0x4a   :  { %2488 = vmatpush3.bf16.msra.mxu0 %v2487_v58  ;;  %928 = vmatprep.mubr.f32.mxu0 %v587_v6  ;;  %v168_v49 = vld [vmem:[#allocation6 + $0x3d0] sm:$0xff]  ;;  %v169_v50 = vld [vmem:[#allocation6 + $0x3d8] sm:$0xff]  ;;  %v2535_v52 = vpack.c.bf16 %v151_v46, %v150_v44  ;;  %v2505_v54 = vpack.c.bf16 %v137_v48, %v136_v47  ;;  %v139_v63 = vld [vmem:[#allocation6 + $0x2e8] sm:$0xff] }
  0x4b   :  { %859 = vmatmul.mubr.f32.vlgmr.msra.gmra.mrb[0].mxu1 %v575_v59  ;;  %2490 = vmatprep.subr.bf16.mxu0 %v2489_v62  ;;  %v120_v55 = vld [vmem:[#allocation6 + $0x250] sm:$0xff]  ;;  %v121_v56 = vld [vmem:[#allocation6 + $0x258] sm:$0xff]  ;;  %v2537_v59 = vpack.c.bf16 %v169_v50, %v168_v49  ;;  %v138_v62 = vld [vmem:[#allocation6 + $0x2e0] sm:$0xff] }
  0x4c   :  { %2520 = vmatpush3.bf16.msra.mxu1 %v2519_v60  ;;  %998 = vmatprep.mubr.f32.mxu1 %v595_v9  ;;  %v152_v58 = vld [vmem:[#allocation6 + $0x350] sm:$0xff]  ;;  %v153_v60 = vld [vmem:[#allocation6 + $0x358] sm:$0xff]  ;;  %v170_v0 = vld [vmem:[#allocation6 + $0x3e0] sm:$0xff]  ;;  %v2509_v4 = vpack.c.bf16 %v139_v63, %v138_v62 }
  0x4d   :  { %2522 = vmatprep.subr.bf16.mxu1 %v2521_v2  ;;  %v171_v1 = vld [vmem:[#allocation6 + $0x3e8] sm:$0xff]  ;;  %v2507_v2 = vpack.c.bf16 %v121_v56, %v120_v55  ;;  %v2539_v3 = vpack.c.bf16 %v153_v60, %v152_v58  ;;  %v122_v5 = vld [vmem:[#allocation6 + $0x260] sm:$0xff]  ;;  %v173_v15 = vld [vmem:[#allocation6 + $0x3f8] sm:$0xff] }
  0x4e   :  { %2492 = vmatpush3.bf16.msra.mxu0 %v2491_v12  ;;  %v123_v6 = vld [vmem:[#allocation6 + $0x268] sm:$0xff]  ;;  %v154_v7 = vld [vmem:[#allocation6 + $0x360] sm:$0xff]  ;;  %v2541_v8 = vpack.c.bf16 %v171_v1, %v170_v0  ;;  %v140_v12 = vld [vmem:[#allocation6 + $0x2f0] sm:$0xff] }
  0x4f   :  { %2494 = vmatprep.subr.bf16.mxu0 %v2493_v14  ;;  %v155_v9 = vld [vmem:[#allocation6 + $0x368] sm:$0xff]  ;;  %v172_v14 = vld [vmem:[#allocation6 + $0x3f0] sm:$0xff]  ;;  %v2511_v16 = vpack.c.bf16 %v123_v6, %v122_v5  ;;  %v125_v21 = vld [vmem:[#allocation6 + $0x278] sm:$0xff] }
  0x50   :  { %2524 = vmatpush3.bf16.msra.mxu1 %v2523_v13  ;;  %v141_v13 = vld [vmem:[#allocation6 + $0x2f8] sm:$0xff]  ;;  %v2543_v17 = vpack.c.bf16 %v155_v9, %v154_v7  ;;  %v124_v19 = vld [vmem:[#allocation6 + $0x270] sm:$0xff]  ;;  %v2545_v23 = vpack.c.bf16 %v173_v15, %v172_v14  ;;  %v222_v28 = vld [vmem:[#allocation6 + $0x580] sm:$0xff] }
  0x51   :  { %2526 = vmatprep.subr.bf16.mxu1 %v2525_v18  ;;  %v2513_v18 = vpack.c.bf16 %v141_v13, %v140_v12  ;;  %v156_v22 = vld [vmem:[#allocation6 + $0x370] sm:$0xff]  ;;  %v157_v24 = vld [vmem:[#allocation6 + $0x378] sm:$0xff]  ;;  %v223_v29 = vld [vmem:[#allocation6 + $0x588] sm:$0xff]  ;;  %v2515_v30 = vpack.c.bf16 %v125_v21, %v124_v19 }
  0x52   :  { %2496 = vmatpush3.bf16.msra.mxu0 %v2495_v25  ;;  %v190_v25 = vld [vmem:[#allocation6 + $0x480] sm:$0xff]  ;;  %v2547_v32 = vpack.c.bf16 %v157_v24, %v156_v22  ;;  %v175_v35 = vld [vmem:[#allocation6 + $0x408] sm:$0xff]  ;;  %v193_v41 = vld [vmem:[#allocation6 + $0x498] sm:$0xff] }
  0x53   :  { %2498 = vmatprep.subr.bf16.mxu0 %v2497_v27  ;;  %v3101_v27 = vsub.s32 4, %v3066_v61  ;;  %v174_v34 = vld [vmem:[#allocation6 + $0x400] sm:$0xff]  ;;  %v224_v44 = vld [vmem:[#allocation6 + $0x590] sm:$0xff]  ;;  %v3110_v47 = vld [vmem:[#allocation3 + $0x8] sm:$0xff] }
  0x54   :  { %2528 = vmatpush3.bf16.msra.mxu1 %v2527_v26  ;;  %v191_v26 = vld [vmem:[#allocation6 + $0x488] sm:$0xff]  ;;  %v206_v36 = vld [vmem:[#allocation6 + $0x500] sm:$0xff]  ;;  %v176_v50 = vld [vmem:[#allocation6 + $0x410] sm:$0xff]  ;;  %v611_v62 = vrot.slane %v3110_v47, %v3072_v11 }
  0x55   :  { %2530 = vmatprep.subr.bf16.mxu1 %v2529_v31  ;;  %v3104_v31 = vsub.s32 6, %v3066_v61  ;;  %v2549_v33 = vpack.c.bf16 %v191_v26, %v190_v25  ;;  %v583_v42 = vrot.slane %v3074_v20, %v3101_v27  ;;  %v2551_v61 = vpack.c.bf16 %v175_v35, %v174_v34  ;;  %v209_v55 = vld [vmem:[#allocation6 + $0x518] sm:$0xff]  ;;  %v194_v56 = vld [vmem:[#allocation6 + $0x4a0] sm:$0xff]  ;;  %v195_v58 = vld [vmem:[#allocation6 + $0x4a8] sm:$0xff] }
  0x56   :  { %2500 = vmatpush3.bf16.msra.mxu0 %v2499_v37  ;;  %v2581_v37 = vpack.c.bf16 %v223_v29, %v222_v28  ;;  %v226_v60 = vld [vmem:[#allocation6 + $0x5a0] sm:$0xff]  ;;  %v2557_v1 = vpack.c.bf16 %v195_v58, %v194_v56  ;;  %v211_v6 = vld [vmem:[#allocation6 + $0x528] sm:$0xff]  ;;  %v196_v7 = vld [vmem:[#allocation6 + $0x4b0] sm:$0xff] }
  0x57   :  { %2502 = vmatprep.subr.bf16.mxu0 %v2501_v40  ;;  %v192_v40 = vld [vmem:[#allocation6 + $0x490] sm:$0xff]  ;;  %v591_v46 = vrot.slane %v3074_v20, %v3104_v31  ;;  %v227_v20 = vld [vmem:[#allocation6 + $0x5a8] sm:$0xff]  ;;  %v229_v12 = vld [vmem:[#allocation6 + $0x5b8] sm:$0xff] }
  0x58   :  { %2532 = vmatpush3.bf16.msra.mxu1 %v2531_v38  ;;  %v207_v38 = vld [vmem:[#allocation6 + $0x508] sm:$0xff]  ;;  %v2553_v49 = vpack.c.bf16 %v193_v41, %v192_v40  ;;  %v2589_v5 = vpack.c.bf16 %v227_v20, %v226_v60  ;;  %v228_v9 = vld [vmem:[#allocation6 + $0x5b0] sm:$0xff]  ;;  %v213_v21 = vld [vmem:[#allocation6 + $0x538] sm:$0xff] }
  0x59   :  { %2534 = vmatprep.subr.bf16.mxu1 %v2533_v45  ;;  %v225_v45 = vld [vmem:[#allocation6 + $0x598] sm:$0xff]  ;;  %v2583_v48 = vpack.c.bf16 %v207_v38, %v206_v36  ;;  %v2593_v19 = vpack.c.bf16 %v229_v12, %v228_v9  ;;  %v198_v22 = vld [vmem:[#allocation6 + $0x4c0] sm:$0xff]  ;;  %v231_v25 = vld [vmem:[#allocation6 + $0x5c8] sm:$0xff] }
  0x5a   :  { %2504 = vmatpush3.bf16.msra.mxu0 %v2503_v51  ;;  %v177_v51 = vld [vmem:[#allocation6 + $0x418] sm:$0xff]  ;;  %v230_v24 = vld [vmem:[#allocation6 + $0x5c0] sm:$0xff]  ;;  %v215_v35 = vld [vmem:[#allocation6 + $0x548] sm:$0xff] }
  0x5b   :  { %2506 = vmatprep.subr.bf16.mxu0 %v2505_v54  ;;  %v2585_v54 = vpack.c.bf16 %v225_v45, %v224_v44  ;;  %v2555_v63 = vpack.c.bf16 %v177_v51, %v176_v50  ;;  %v2597_v34 = vpack.c.bf16 %v231_v25, %v230_v24  ;;  %v200_v36 = vld [vmem:[#allocation6 + $0x4d0] sm:$0xff]  ;;  %v233_v40 = vld [vmem:[#allocation6 + $0x5d8] sm:$0xff]  ;;  %v202_v50 = vld [vmem:[#allocation6 + $0x4e0] sm:$0xff] }
  0x5c   :  { %2536 = vmatpush3.bf16.msra.mxu1 %v2535_v52  ;;  %v208_v52 = vld [vmem:[#allocation6 + $0x510] sm:$0xff]  ;;  %v203_v51 = vld [vmem:[#allocation6 + $0x4e8] sm:$0xff]  ;;  %v218_v20 = vld [vmem:[#allocation6 + $0x560] sm:$0xff] }
  0x5d   :  { %2538 = vmatprep.subr.bf16.mxu1 %v2537_v59  ;;  %v603_v59 = vrot.slane %v3110_v47, %v3069_v10  ;;  %v2587_v0 = vpack.c.bf16 %v209_v55, %v208_v52  ;;  %v232_v38 = vld [vmem:[#allocation6 + $0x5d0] sm:$0xff]  ;;  %v234_v52 = vld [vmem:[#allocation6 + $0x5e0] sm:$0xff]  ;;  %v2573_v58 = vpack.c.bf16 %v203_v51, %v202_v50  ;;  %v187_v60 = vld [vmem:[#allocation6 + $0x468] sm:$0xff]  ;;  %v627_v50 = vrot.slane %v3110_v47, %v3092_v57 }
  0x5e   :  { %2508 = vmatpush3.bf16.msra.mxu0 %v2507_v2  ;;  %v178_v2 = vld [vmem:[#allocation6 + $0x420] sm:$0xff]  ;;  %v184_v45 = vld [vmem:[#allocation6 + $0x450] sm:$0xff] }
  0x5f   :  { %2510 = vmatprep.subr.bf16.mxu0 %v2509_v4  ;;  %v210_v4 = vld [vmem:[#allocation6 + $0x520] sm:$0xff]  ;;  %v220_v9 = vld [vmem:[#allocation6 + $0x570] sm:$0xff] }
  0x60   :  { %2540 = vmatpush3.bf16.msra.mxu1 %v2539_v3  ;;  %v179_v3 = vld [vmem:[#allocation6 + $0x428] sm:$0xff]  ;;  %v2591_v14 = vpack.c.bf16 %v211_v6, %v210_v4  ;;  %v270_v24 = vld [vmem:[#allocation6 + $0x700] sm:$0xff] }
  0x61   :  { %2542 = vmatprep.subr.bf16.mxu1 %v2541_v8  ;;  %v197_v8 = vld [vmem:[#allocation6 + $0x4b8] sm:$0xff]  ;;  %v2559_v13 = vpack.c.bf16 %v179_v3, %v178_v2  ;;  %v236_v2 = vld [vmem:[#allocation6 + $0x5f0] sm:$0xff] }
  0x62   :  { %2512 = vmatpush3.bf16.msra.mxu0 %v2511_v16  ;;  %v2561_v15 = vpack.c.bf16 %v197_v8, %v196_v7  ;;  %v180_v16 = vld [vmem:[#allocation6 + $0x430] sm:$0xff]  ;;  %v237_v3 = vld [vmem:[#allocation6 + $0x5f8] sm:$0xff] }
  0x63   :  { %2514 = vmatprep.subr.bf16.mxu0 %v2513_v18  ;;  %v212_v18 = vld [vmem:[#allocation6 + $0x530] sm:$0xff]  ;;  %v189_v8 = vld [vmem:[#allocation6 + $0x478] sm:$0xff]  ;;  %v2609_v12 = vpack.c.bf16 %v237_v3, %v236_v2 }
  0x64   :  { %2544 = vmatpush3.bf16.msra.mxu1 %v2543_v17  ;;  %v181_v17 = vld [vmem:[#allocation6 + $0x438] sm:$0xff]  ;;  %v2595_v28 = vpack.c.bf16 %v213_v21, %v212_v18  ;;  %v188_v7 = vld [vmem:[#allocation6 + $0x470] sm:$0xff] }
  0x65   :  { %2546 = vmatprep.subr.bf16.mxu1 %v2545_v23  ;;  %v199_v23 = vld [vmem:[#allocation6 + $0x4c8] sm:$0xff]  ;;  %v2563_v26 = vpack.c.bf16 %v181_v17, %v180_v16  ;;  %v286_v16 = vld [vmem:[#allocation6 + $0x780] sm:$0xff]  ;;  %v2579_v18 = vpack.c.bf16 %v189_v8, %v188_v7  ;;  %v277_v8 = vld [vmem:[#allocation6 + $0x738] sm:$0xff] }
  0x66   :  { %2516 = vmatpush3.bf16.msra.mxu0 %v2515_v30  ;;  %v2565_v29 = vpack.c.bf16 %v199_v23, %v198_v22  ;;  %v182_v30 = vld [vmem:[#allocation6 + $0x440] sm:$0xff]  ;;  %v287_v17 = vld [vmem:[#allocation6 + $0x788] sm:$0xff] }
  0x67   :  { %2550 = vmatprep.subr.bf16.mxu0 %v2549_v33  ;;  %v214_v33 = vld [vmem:[#allocation6 + $0x540] sm:$0xff]  ;;  %v239_v23 = vld [vmem:[#allocation6 + $0x608] sm:$0xff]  ;;  %v2645_v25 = vpack.c.bf16 %v287_v17, %v286_v16 }
  0x68   :  { %2548 = vmatpush3.bf16.msra.mxu1 %v2547_v32  ;;  %v183_v32 = vld [vmem:[#allocation6 + $0x448] sm:$0xff]  ;;  %v238_v22 = vld [vmem:[#allocation6 + $0x600] sm:$0xff] }
  0x69   :  { %2582 = vmatprep.subr.bf16.mxu1 %v2581_v37  ;;  %929 = vmatmul.mubr.f32.vlgmr.msra.gmra.mrb[2].mxu0 %v583_v42  ;;  %v201_v37 = vld [vmem:[#allocation6 + $0x4d8] sm:$0xff]  ;;  %v2567_v41 = vpack.c.bf16 %v183_v32, %v182_v30  ;;  %v2599_v42 = vpack.c.bf16 %v215_v35, %v214_v33  ;;  %v599_v30 = vrot.slane %v3110_v47, %v3081_v39  ;;  %v288_v32 = vld [vmem:[#allocation6 + $0x790] sm:$0xff] }
  0x6a   :  { %2552 = vmatpush3.bf16.msra.mxu0 %v2551_v61  ;;  %1068 = vmatprep.mubr.f32.mxu0 %v603_v59  ;;  %v2569_v44 = vpack.c.bf16 %v201_v37, %v200_v36  ;;  %v185_v61 = vld [vmem:[#allocation6 + $0x458] sm:$0xff]  ;;  %v186_v59 = vld [vmem:[#allocation6 + $0x460] sm:$0xff]  ;;  %v607_v35 = vrot.slane %v3110_v47, %v3084_v43 }
  0x6b   :  { %999 = vmatmul.mubr.f32.vlgmr.msra.gmra.mrb[2].mxu1 %v591_v46  ;;  %2554 = vmatprep.subr.bf16.mxu0 %v2553_v49  ;;  %v216_v46 = vld [vmem:[#allocation6 + $0x550] sm:$0xff]  ;;  %v217_v49 = vld [vmem:[#allocation6 + $0x558] sm:$0xff]  ;;  %v2571_v55 = vpack.c.bf16 %v185_v61, %v184_v45  ;;  %v2575_v4 = vpack.c.bf16 %v187_v60, %v186_v59  ;;  %v258_v45 = vld [vmem:[#allocation6 + $0x6a0] sm:$0xff] }
  0x6c   :  { %2584 = vmatpush3.bf16.msra.mxu1 %v2583_v48  ;;  %1138 = vmatprep.mubr.f32.mxu1 %v611_v62  ;;  %v2601_v48 = vpack.c.bf16 %v233_v40, %v232_v38  ;;  %v2603_v56 = vpack.c.bf16 %v217_v49, %v216_v46  ;;  %v289_v33 = vld [vmem:[#allocation6 + $0x798] sm:$0xff]  ;;  %v240_v38 = vld [vmem:[#allocation6 + $0x610] sm:$0xff]  ;;  %v259_v61 = vld [vmem:[#allocation6 + $0x6a8] sm:$0xff]  ;;  %v619_v46 = vrot.slane %v3110_v47, %v3087_v53 }
  0x6d   :  { %2586 = vmatprep.subr.bf16.mxu1 %v2585_v54  ;;  %v235_v54 = vld [vmem:[#allocation6 + $0x5e8] sm:$0xff]  ;;  %v241_v40 = vld [vmem:[#allocation6 + $0x618] sm:$0xff] }
  0x6e   :  { %2556 = vmatpush3.bf16.msra.mxu0 %v2555_v63  ;;  %v2605_v62 = vpack.c.bf16 %v235_v54, %v234_v52  ;;  %v219_v63 = vld [vmem:[#allocation6 + $0x568] sm:$0xff]  ;;  %v2619_v51 = vpack.c.bf16 %v241_v40, %v240_v38  ;;  %v2621_v54 = vpack.c.bf16 %v259_v61, %v258_v45  ;;  %v266_v38 = vld [vmem:[#allocation6 + $0x6e0] sm:$0xff] }
  0x6f   :  { %2558 = vmatprep.subr.bf16.mxu0 %v2557_v1  ;;  %v205_v1 = vld [vmem:[#allocation6 + $0x4f8] sm:$0xff]  ;;  %v291_v49 = vld [vmem:[#allocation6 + $0x7a8] sm:$0xff] }
  0x70   :  { %2588 = vmatpush3.bf16.msra.mxu1 %v2587_v0  ;;  %v204_v0 = vld [vmem:[#allocation6 + $0x4f0] sm:$0xff]  ;;  %v275_v60 = vld [vmem:[#allocation6 + $0x728] sm:$0xff] }
  0x71   :  { %2590 = vmatprep.subr.bf16.mxu1 %v2589_v5  ;;  %v2607_v5 = vpack.c.bf16 %v219_v63, %v218_v20  ;;  %v2577_v6 = vpack.c.bf16 %v205_v1, %v204_v0  ;;  %v260_v20 = vld [vmem:[#allocation6 + $0x6b0] sm:$0xff]  ;;  %v293_v0 = vld [vmem:[#allocation6 + $0x7b8] sm:$0xff]  ;;  %v267_v40 = vld [vmem:[#allocation6 + $0x6e8] sm:$0xff] }
  0x72   :  { %2560 = vmatpush3.bf16.msra.mxu0 %v2559_v13  ;;  %v221_v13 = vld [vmem:[#allocation6 + $0x578] sm:$0xff]  ;;  %v292_v63 = vld [vmem:[#allocation6 + $0x7b0] sm:$0xff]  ;;  %v2637_v61 = vpack.c.bf16 %v267_v40, %v266_v38  ;;  %v355_v38 = vld [vmem:[#allocation6 + $0x9a8] sm:$0xff] }
  0x73   :  { %2562 = vmatprep.subr.bf16.mxu0 %v2561_v15  ;;  %v255_v15 = vld [vmem:[#allocation6 + $0x688] sm:$0xff]  ;;  %v2657_v7 = vpack.c.bf16 %v293_v0, %v292_v63  ;;  %v284_v63 = vld [vmem:[#allocation6 + $0x770] sm:$0xff] }
  0x74   :  { %2592 = vmatpush3.bf16.msra.mxu1 %v2591_v14  ;;  %v254_v14 = vld [vmem:[#allocation6 + $0x680] sm:$0xff] }
  0x75   :  { %2594 = vmatprep.subr.bf16.mxu1 %v2593_v19  ;;  %v2611_v19 = vpack.c.bf16 %v221_v13, %v220_v9  ;;  %v2613_v21 = vpack.c.bf16 %v255_v15, %v254_v14  ;;  %v262_v9 = vld [vmem:[#allocation6 + $0x6c0] sm:$0xff]  ;;  %v295_v14 = vld [vmem:[#allocation6 + $0x7c8] sm:$0xff] }
  0x76   :  { %2564 = vmatpush3.bf16.msra.mxu0 %v2563_v26  ;;  %v271_v26 = vld [vmem:[#allocation6 + $0x708] sm:$0xff]  ;;  %v294_v13 = vld [vmem:[#allocation6 + $0x7c0] sm:$0xff] }
  0x77   :  { %2566 = vmatprep.subr.bf16.mxu0 %v2565_v29  ;;  %v257_v29 = vld [vmem:[#allocation6 + $0x698] sm:$0xff]  ;;  %v2647_v36 = vpack.c.bf16 %v271_v26, %v270_v24  ;;  %v264_v24 = vld [vmem:[#allocation6 + $0x6d0] sm:$0xff] }
  0x78   :  { %2596 = vmatpush3.bf16.msra.mxu1 %v2595_v28  ;;  %v256_v28 = vld [vmem:[#allocation6 + $0x690] sm:$0xff] }
  0x79   :  { %2598 = vmatprep.subr.bf16.mxu1 %v2597_v34  ;;  %v2615_v34 = vpack.c.bf16 %v239_v23, %v238_v22  ;;  %v2617_v37 = vpack.c.bf16 %v257_v29, %v256_v28  ;;  %v2661_v22 = vpack.c.bf16 %v295_v14, %v294_v13  ;;  %v279_v23 = vld [vmem:[#allocation6 + $0x748] sm:$0xff]  ;;  %v296_v26 = vld [vmem:[#allocation6 + $0x7d0] sm:$0xff]  ;;  %v297_v28 = vld [vmem:[#allocation6 + $0x7d8] sm:$0xff] }
  0x7a   :  { %2568 = vmatpush3.bf16.msra.mxu0 %v2567_v41  ;;  %v272_v41 = vld [vmem:[#allocation6 + $0x710] sm:$0xff]  ;;  %v334_v13 = vld [vmem:[#allocation6 + $0x900] sm:$0xff] }
  0x7b   :  { %2570 = vmatprep.subr.bf16.mxu0 %v2569_v44  ;;  %v273_v44 = vld [vmem:[#allocation6 + $0x718] sm:$0xff] }
  0x7c   :  { %2600 = vmatpush3.bf16.msra.mxu1 %v2599_v42  ;;  %v2649_v42 = vpack.c.bf16 %v289_v33, %v288_v32  ;;  %v2651_v52 = vpack.c.bf16 %v273_v44, %v272_v41  ;;  %v248_v33 = vld [vmem:[#allocation6 + $0x650] sm:$0xff]  ;;  %v298_v41 = vld [vmem:[#allocation6 + $0x7e0] sm:$0xff] }
  0x7d   :  { %2602 = vmatprep.subr.bf16.mxu1 %v2601_v48  ;;  %v290_v48 = vld [vmem:[#allocation6 + $0x7a0] sm:$0xff] }
  0x7e   :  { %2572 = vmatpush3.bf16.msra.mxu0 %v2571_v55  ;;  %v242_v55 = vld [vmem:[#allocation6 + $0x620] sm:$0xff]  ;;  %v2653_v59 = vpack.c.bf16 %v291_v49, %v290_v48  ;;  %v251_v48 = vld [vmem:[#allocation6 + $0x668] sm:$0xff] }
  0x7f   :  { %2574 = vmatprep.subr.bf16.mxu0 %v2573_v58  ;;  %v274_v58 = vld [vmem:[#allocation6 + $0x720] sm:$0xff] }
  0x80   :  { %2604 = vmatpush3.bf16.msra.mxu1 %v2603_v56  ;;  %v243_v56 = vld [vmem:[#allocation6 + $0x628] sm:$0xff]  ;;  %v2655_v2 = vpack.c.bf16 %v275_v60, %v274_v58  ;;  %v282_v49 = vld [vmem:[#allocation6 + $0x760] sm:$0xff] }
  0x81   :  { %2606 = vmatprep.subr.bf16.mxu1 %v2605_v62  ;;  %v261_v62 = vld [vmem:[#allocation6 + $0x6b8] sm:$0xff]  ;;  %v2623_v1 = vpack.c.bf16 %v243_v56, %v242_v55  ;;  %v300_v55 = vld [vmem:[#allocation6 + $0x7f0] sm:$0xff] }
  0x82   :  { %2576 = vmatpush3.bf16.msra.mxu0 %v2575_v4  ;;  %v2625_v3 = vpack.c.bf16 %v261_v62, %v260_v20  ;;  %v244_v4 = vld [vmem:[#allocation6 + $0x630] sm:$0xff]  ;;  %v301_v56 = vld [vmem:[#allocation6 + $0x7f8] sm:$0xff] }
  0x83   :  { %2578 = vmatprep.subr.bf16.mxu0 %v2577_v6  ;;  %v276_v6 = vld [vmem:[#allocation6 + $0x730] sm:$0xff]  ;;  %v253_v62 = vld [vmem:[#allocation6 + $0x678] sm:$0xff]  ;;  %v2673_v0 = vpack.c.bf16 %v301_v56, %v300_v55 }
  0x84   :  { %2608 = vmatpush3.bf16.msra.mxu1 %v2607_v5  ;;  %v245_v5 = vld [vmem:[#allocation6 + $0x638] sm:$0xff]  ;;  %v2659_v16 = vpack.c.bf16 %v277_v8, %v276_v6  ;;  %v252_v20 = vld [vmem:[#allocation6 + $0x670] sm:$0xff] }
  0x85   :  { %2610 = vmatprep.subr.bf16.mxu1 %v2609_v12  ;;  %v263_v12 = vld [vmem:[#allocation6 + $0x6c8] sm:$0xff]  ;;  %v2627_v15 = vpack.c.bf16 %v245_v5, %v244_v4  ;;  %v350_v4 = vld [vmem:[#allocation6 + $0x980] sm:$0xff]  ;;  %v2643_v6 = vpack.c.bf16 %v253_v62, %v252_v20  ;;  %v341_v62 = vld [vmem:[#allocation6 + $0x938] sm:$0xff] }
  0x86   :  { %2580 = vmatpush3.bf16.msra.mxu0 %v2579_v18  ;;  %v2629_v17 = vpack.c.bf16 %v263_v12, %v262_v9  ;;  %v246_v18 = vld [vmem:[#allocation6 + $0x640] sm:$0xff]  ;;  %v351_v5 = vld [vmem:[#allocation6 + $0x988] sm:$0xff] }
  0x87   :  { %2614 = vmatprep.subr.bf16.mxu0 %v2613_v21  ;;  %v278_v21 = vld [vmem:[#allocation6 + $0x740] sm:$0xff]  ;;  %v303_v12 = vld [vmem:[#allocation6 + $0x808] sm:$0xff]  ;;  %v2709_v14 = vpack.c.bf16 %v351_v5, %v350_v4 }
  0x88   :  { %2612 = vmatpush3.bf16.msra.mxu1 %v2611_v19  ;;  %v247_v19 = vld [vmem:[#allocation6 + $0x648] sm:$0xff]  ;;  %v302_v9 = vld [vmem:[#allocation6 + $0x800] sm:$0xff] }
  0x89   :  { %2646 = vmatprep.subr.bf16.mxu1 %v2645_v25  ;;  %1069 = vmatmul.mubr.f32.vlgmr.msra.gmra.mrb[4].mxu0 %v599_v30  ;;  %v265_v25 = vld [vmem:[#allocation6 + $0x6d8] sm:$0xff]  ;;  %v2631_v29 = vpack.c.bf16 %v247_v19, %v246_v18  ;;  %v2663_v30 = vpack.c.bf16 %v279_v23, %v278_v21  ;;  %v615_v18 = vrot.slane %v3110_v47, %v3101_v27  ;;  %v352_v19 = vld [vmem:[#allocation6 + $0x990] sm:$0xff] }
  0x8a   :  { %2616 = vmatpush3.bf16.msra.mxu0 %v2615_v34  ;;  %1208 = vmatprep.mubr.f32.mxu0 %v619_v46  ;;  %v2633_v32 = vpack.c.bf16 %v265_v25, %v264_v24  ;;  %v249_v34 = vld [vmem:[#allocation6 + $0x658] sm:$0xff]  ;;  %v250_v46 = vld [vmem:[#allocation6 + $0x660] sm:$0xff]  ;;  %v2679_v23 = vpack.c.bf16 %v303_v12, %v302_v9  ;;  %v623_v24 = vrot.slane %v3110_v47, %v3104_v31  ;;  %v343_v12 = vld [vmem:[#allocation6 + $0x948] sm:$0xff] }
  0x8b   :  { %1139 = vmatmul.mubr.f32.vlgmr.msra.gmra.mrb[4].mxu1 %v607_v35  ;;  %2618 = vmatprep.subr.bf16.mxu0 %v2617_v37  ;;  %v280_v35 = vld [vmem:[#allocation6 + $0x750] sm:$0xff]  ;;  %v281_v37 = vld [vmem:[#allocation6 + $0x758] sm:$0xff]  ;;  %v2635_v44 = vpack.c.bf16 %v249_v34, %v248_v33  ;;  %v2639_v58 = vpack.c.bf16 %v251_v48, %v250_v46  ;;  %v322_v34 = vld [vmem:[#allocation6 + $0x8a0] sm:$0xff] }
  0x8c   :  { %2648 = vmatpush3.bf16.msra.mxu1 %v2647_v36  ;;  %1278 = vmatprep.mubr.f32.mxu1 %v627_v50  ;;  %v2665_v36 = vpack.c.bf16 %v297_v28, %v296_v26  ;;  %v2667_v45 = vpack.c.bf16 %v281_v37, %v280_v35  ;;  %v353_v21 = vld [vmem:[#allocation6 + $0x998] sm:$0xff]  ;;  %v304_v28 = vld [vmem:[#allocation6 + $0x810] sm:$0xff]  ;;  %v323_v35 = vld [vmem:[#allocation6 + $0x8a8] sm:$0xff] }
  0x8d   :  { %2650 = vmatprep.subr.bf16.mxu1 %v2649_v42  ;;  %v299_v42 = vld [vmem:[#allocation6 + $0x7e8] sm:$0xff]  ;;  %v337_v33 = vld [vmem:[#allocation6 + $0x918] sm:$0xff]  ;;  %v354_v37 = vld [vmem:[#allocation6 + $0x9a0] sm:$0xff] }
  0x8e   :  { %2620 = vmatpush3.bf16.msra.mxu0 %v2619_v51  ;;  %v2669_v50 = vpack.c.bf16 %v299_v42, %v298_v41  ;;  %v283_v51 = vld [vmem:[#allocation6 + $0x768] sm:$0xff]  ;;  %v2685_v42 = vpack.c.bf16 %v323_v35, %v322_v34  ;;  %v2717_v46 = vpack.c.bf16 %v355_v38, %v354_v37  ;;  %v346_v38 = vld [vmem:[#allocation6 + $0x960] sm:$0xff] }
  0x8f   :  { %2622 = vmatprep.subr.bf16.mxu0 %v2621_v54  ;;  %v269_v54 = vld [vmem:[#allocation6 + $0x6f8] sm:$0xff]  ;;  %v339_v48 = vld [vmem:[#allocation6 + $0x928] sm:$0xff] }
  0x90   :  { %2652 = vmatpush3.bf16.msra.mxu1 %v2651_v52  ;;  %v268_v52 = vld [vmem:[#allocation6 + $0x6f0] sm:$0xff]  ;;  %v315_v37 = vld [vmem:[#allocation6 + $0x868] sm:$0xff] }
  0x91   :  { %2654 = vmatprep.subr.bf16.mxu1 %v2653_v59  ;;  %v2671_v59 = vpack.c.bf16 %v283_v51, %v282_v49  ;;  %v2641_v60 = vpack.c.bf16 %v269_v54, %v268_v52  ;;  %v324_v49 = vld [vmem:[#allocation6 + $0x8b0] sm:$0xff]  ;;  %v357_v52 = vld [vmem:[#allocation6 + $0x9b8] sm:$0xff] }
  0x92   :  { %2624 = vmatpush3.bf16.msra.mxu0 %v2623_v1  ;;  %v285_v1 = vld [vmem:[#allocation6 + $0x778] sm:$0xff]  ;;  %v356_v51 = vld [vmem:[#allocation6 + $0x9b0] sm:$0xff] }
  0x93   :  { %2626 = vmatprep.subr.bf16.mxu0 %v2625_v3  ;;  %v319_v3 = vld [vmem:[#allocation6 + $0x888] sm:$0xff]  ;;  %v2721_v20 = vpack.c.bf16 %v357_v52, %v356_v51  ;;  %v348_v51 = vld [vmem:[#allocation6 + $0x970] sm:$0xff] }
  0x94   :  { %2656 = vmatpush3.bf16.msra.mxu1 %v2655_v2  ;;  %v318_v2 = vld [vmem:[#allocation6 + $0x880] sm:$0xff] }
  0x95   :  { %2658 = vmatprep.subr.bf16.mxu1 %v2657_v7  ;;  %v2675_v7 = vpack.c.bf16 %v285_v1, %v284_v63  ;;  %v2677_v8 = vpack.c.bf16 %v319_v3, %v318_v2  ;;  %v326_v63 = vld [vmem:[#allocation6 + $0x8c0] sm:$0xff]  ;;  %v359_v2 = vld [vmem:[#allocation6 + $0x9c8] sm:$0xff] }
  0x96   :  { %2628 = vmatpush3.bf16.msra.mxu0 %v2627_v15  ;;  %v335_v15 = vld [vmem:[#allocation6 + $0x908] sm:$0xff]  ;;  %v358_v1 = vld [vmem:[#allocation6 + $0x9c0] sm:$0xff] }
  0x97   :  { %2630 = vmatprep.subr.bf16.mxu0 %v2629_v17  ;;  %v321_v17 = vld [vmem:[#allocation6 + $0x898] sm:$0xff]  ;;  %v2711_v25 = vpack.c.bf16 %v335_v15, %v334_v13  ;;  %v2725_v9 = vpack.c.bf16 %v359_v2, %v358_v1  ;;  %v328_v13 = vld [vmem:[#allocation6 + $0x8d0] sm:$0xff]  ;;  %v398_v1 = vld [vmem:[#allocation6 + $0xb00] sm:$0xff] }
  0x98   :  { %2660 = vmatpush3.bf16.msra.mxu1 %v2659_v16  ;;  %v320_v16 = vld [vmem:[#allocation6 + $0x890] sm:$0xff] }
  0x99   :  { %2662 = vmatprep.subr.bf16.mxu1 %v2661_v22  ;;  %v3126_v22 = vld [vmem:[#allocation3 + $0x10] sm:$0xff]  ;;  %v2681_v26 = vpack.c.bf16 %v321_v17, %v320_v16  ;;  %v361_v16 = vld [vmem:[#allocation6 + $0x9d8] sm:$0xff] }
  0x9a   :  { %2632 = vmatpush3.bf16.msra.mxu0 %v2631_v29  ;;  %v305_v29 = vld [vmem:[#allocation6 + $0x818] sm:$0xff]  ;;  %v643_v47 = vrot.slane %v3126_v22, %v3072_v11  ;;  %v360_v15 = vld [vmem:[#allocation6 + $0x9d0] sm:$0xff] }
  0x9b   :  { %2634 = vmatprep.subr.bf16.mxu0 %v2633_v32  ;;  %v2713_v32 = vpack.c.bf16 %v353_v21, %v352_v19  ;;  %v2683_v40 = vpack.c.bf16 %v305_v29, %v304_v28  ;;  %v312_v21 = vld [vmem:[#allocation6 + $0x850] sm:$0xff]  ;;  %v330_v28 = vld [vmem:[#allocation6 + $0x8e0] sm:$0xff]  ;;  %v331_v29 = vld [vmem:[#allocation6 + $0x8e8] sm:$0xff] }
  0x9c   :  { %2664 = vmatpush3.bf16.msra.mxu1 %v2663_v30  ;;  %v336_v30 = vld [vmem:[#allocation6 + $0x910] sm:$0xff]  ;;  %v2701_v35 = vpack.c.bf16 %v331_v29, %v330_v28  ;;  %v659_v28 = vrot.slane %v3126_v22, %v3092_v57 }
  0x9d   :  { %2666 = vmatprep.subr.bf16.mxu1 %v2665_v36  ;;  %v635_v36 = vrot.slane %v3126_v22, %v3069_v10  ;;  %v2715_v41 = vpack.c.bf16 %v337_v33, %v336_v30  ;;  %v362_v30 = vld [vmem:[#allocation6 + $0x9e0] sm:$0xff] }
  0x9e   :  { %2636 = vmatpush3.bf16.msra.mxu0 %v2635_v44  ;;  %v306_v44 = vld [vmem:[#allocation6 + $0x820] sm:$0xff] }
  0x9f   :  { %2638 = vmatprep.subr.bf16.mxu0 %v2637_v61  ;;  %v338_v61 = vld [vmem:[#allocation6 + $0x920] sm:$0xff] }
  0xa0   :  { %2668 = vmatpush3.bf16.msra.mxu1 %v2667_v45  ;;  %v307_v45 = vld [vmem:[#allocation6 + $0x828] sm:$0xff]  ;;  %v2719_v55 = vpack.c.bf16 %v339_v48, %v338_v61 }
  0xa1   :  { %2670 = vmatprep.subr.bf16.mxu1 %v2669_v50  ;;  %v325_v50 = vld [vmem:[#allocation6 + $0x8b8] sm:$0xff]  ;;  %v2687_v54 = vpack.c.bf16 %v307_v45, %v306_v44  ;;  %v364_v44 = vld [vmem:[#allocation6 + $0x9f0] sm:$0xff] }
  0xa2   :  { %2640 = vmatpush3.bf16.msra.mxu0 %v2639_v58  ;;  %v2689_v56 = vpack.c.bf16 %v325_v50, %v324_v49  ;;  %v308_v58 = vld [vmem:[#allocation6 + $0x830] sm:$0xff]  ;;  %v365_v45 = vld [vmem:[#allocation6 + $0x9f8] sm:$0xff] }
  0xa3   :  { %2642 = vmatprep.subr.bf16.mxu0 %v2641_v60  ;;  %v340_v60 = vld [vmem:[#allocation6 + $0x930] sm:$0xff]  ;;  %v317_v50 = vld [vmem:[#allocation6 + $0x878] sm:$0xff]  ;;  %v2737_v52 = vpack.c.bf16 %v365_v45, %v364_v44 }
  0xa4   :  { %2672 = vmatpush3.bf16.msra.mxu1 %v2671_v59  ;;  %v309_v59 = vld [vmem:[#allocation6 + $0x838] sm:$0xff]  ;;  %v2723_v4 = vpack.c.bf16 %v341_v62, %v340_v60  ;;  %v316_v49 = vld [vmem:[#allocation6 + $0x870] sm:$0xff] }
  0xa5   :  { %2674 = vmatprep.subr.bf16.mxu1 %v2673_v0  ;;  %v327_v0 = vld [vmem:[#allocation6 + $0x8c8] sm:$0xff]  ;;  %v2691_v3 = vpack.c.bf16 %v309_v59, %v308_v58  ;;  %v414_v58 = vld [vmem:[#allocation6 + $0xb80] sm:$0xff]  ;;  %v2707_v60 = vpack.c.bf16 %v317_v50, %v316_v49  ;;  %v405_v50 = vld [vmem:[#allocation6 + $0xb38] sm:$0xff] }
  0xa6   :  { %2644 = vmatpush3.bf16.msra.mxu0 %v2643_v6  ;;  %v2693_v5 = vpack.c.bf16 %v327_v0, %v326_v63  ;;  %v310_v6 = vld [vmem:[#allocation6 + $0x840] sm:$0xff]  ;;  %v415_v59 = vld [vmem:[#allocation6 + $0xb88] sm:$0xff] }
  0xa7   :  { %2678 = vmatprep.subr.bf16.mxu0 %v2677_v8  ;;  %v342_v8 = vld [vmem:[#allocation6 + $0x940] sm:$0xff]  ;;  %v367_v0 = vld [vmem:[#allocation6 + $0xa08] sm:$0xff]  ;;  %v2773_v2 = vpack.c.bf16 %v415_v59, %v414_v58 }
  0xa8   :  { %2676 = vmatpush3.bf16.msra.mxu1 %v2675_v7  ;;  %v311_v7 = vld [vmem:[#allocation6 + $0x848] sm:$0xff]  ;;  %v366_v63 = vld [vmem:[#allocation6 + $0xa00] sm:$0xff] }
  0xa9   :  { %2710 = vmatprep.subr.bf16.mxu1 %v2709_v14  ;;  %1209 = vmatmul.mubr.f32.vlgmr.msra.gmra.mrb[6].mxu0 %v615_v18  ;;  %v329_v14 = vld [vmem:[#allocation6 + $0x8d8] sm:$0xff]  ;;  %v2695_v17 = vpack.c.bf16 %v311_v7, %v310_v6  ;;  %v2727_v18 = vpack.c.bf16 %v343_v12, %v342_v8  ;;  %v631_v6 = vrot.slane %v3126_v22, %v3081_v39  ;;  %v416_v7 = vld [vmem:[#allocation6 + $0xb90] sm:$0xff] }
  0xaa   :  { %2680 = vmatpush3.bf16.msra.mxu0 %v2679_v23  ;;  %1348 = vmatprep.mubr.f32.mxu0 %v635_v36  ;;  %v2697_v19 = vpack.c.bf16 %v329_v14, %v328_v13  ;;  %v313_v23 = vld [vmem:[#allocation6 + $0x858] sm:$0xff]  ;;  %v314_v36 = vld [vmem:[#allocation6 + $0x860] sm:$0xff]  ;;  %v639_v12 = vrot.slane %v3126_v22, %v3084_v43 }
  0xab   :  { %1279 = vmatmul.mubr.f32.vlgmr.msra.gmra.mrb[6].mxu1 %v623_v24  ;;  %2682 = vmatprep.subr.bf16.mxu0 %v2681_v26  ;;  %v344_v24 = vld [vmem:[#allocation6 + $0x950] sm:$0xff]  ;;  %v345_v26 = vld [vmem:[#allocation6 + $0x958] sm:$0xff]  ;;  %v2699_v33 = vpack.c.bf16 %v313_v23, %v312_v21  ;;  %v2703_v61 = vpack.c.bf16 %v315_v37, %v314_v36  ;;  %v386_v21 = vld [vmem:[#allocation6 + $0xaa0] sm:$0xff] }
  0xac   :  { %2712 = vmatpush3.bf16.msra.mxu1 %v2711_v25  ;;  %1418 = vmatprep.mubr.f32.mxu1 %v643_v47  ;;  %v2729_v25 = vpack.c.bf16 %v361_v16, %v360_v15  ;;  %v2731_v34 = vpack.c.bf16 %v345_v26, %v344_v24  ;;  %v417_v8 = vld [vmem:[#allocation6 + $0xb98] sm:$0xff]  ;;  %v368_v15 = vld [vmem:[#allocation6 + $0xa10] sm:$0xff]  ;;  %v387_v23 = vld [vmem:[#allocation6 + $0xaa8] sm:$0xff]  ;;  %v651_v24 = vrot.slane %v3126_v22, %v3087_v53 }
  0xad   :  { %2714 = vmatprep.subr.bf16.mxu1 %v2713_v32  ;;  %v363_v32 = vld [vmem:[#allocation6 + $0x9e8] sm:$0xff]  ;;  %v369_v16 = vld [vmem:[#allocation6 + $0xa18] sm:$0xff] }
  0xae   :  { %2684 = vmatpush3.bf16.msra.mxu0 %v2683_v40  ;;  %v2733_v47 = vpack.c.bf16 %v363_v32, %v362_v30  ;;  %v347_v40 = vld [vmem:[#allocation6 + $0x968] sm:$0xff]  ;;  %v2747_v29 = vpack.c.bf16 %v369_v16, %v368_v15  ;;  %v2749_v32 = vpack.c.bf16 %v387_v23, %v386_v21  ;;  %v394_v15 = vld [vmem:[#allocation6 + $0xae0] sm:$0xff] }
  0xaf   :  { %2686 = vmatprep.subr.bf16.mxu0 %v2685_v42  ;;  %v333_v42 = vld [vmem:[#allocation6 + $0x8f8] sm:$0xff]  ;;  %v419_v26 = vld [vmem:[#allocation6 + $0xba8] sm:$0xff] }
  0xb0   :  { %2716 = vmatpush3.bf16.msra.mxu1 %v2715_v41  ;;  %v332_v41 = vld [vmem:[#allocation6 + $0x8f0] sm:$0xff]  ;;  %v403_v37 = vld [vmem:[#allocation6 + $0xb28] sm:$0xff] }
  0xb1   :  { %2718 = vmatprep.subr.bf16.mxu1 %v2717_v46  ;;  %v2735_v46 = vpack.c.bf16 %v347_v40, %v346_v38  ;;  %v2705_v48 = vpack.c.bf16 %v333_v42, %v332_v41  ;;  %v388_v38 = vld [vmem:[#allocation6 + $0xab0] sm:$0xff]  ;;  %v421_v41 = vld [vmem:[#allocation6 + $0xbb8] sm:$0xff]  ;;  %v395_v16 = vld [vmem:[#allocation6 + $0xae8] sm:$0xff] }
  0xb2   :  { %2688 = vmatpush3.bf16.msra.mxu0 %v2687_v54  ;;  %v349_v54 = vld [vmem:[#allocation6 + $0x978] sm:$0xff]  ;;  %v420_v40 = vld [vmem:[#allocation6 + $0xbb0] sm:$0xff]  ;;  %v2765_v23 = vpack.c.bf16 %v395_v16, %v394_v15  ;;  %v483_v15 = vld [vmem:[#allocation6 + $0xda8] sm:$0xff] }
  0xb3   :  { %2690 = vmatprep.subr.bf16.mxu0 %v2689_v56  ;;  %v383_v56 = vld [vmem:[#allocation6 + $0xa88] sm:$0xff]  ;;  %v2785_v49 = vpack.c.bf16 %v421_v41, %v420_v40  ;;  %v412_v40 = vld [vmem:[#allocation6 + $0xb70] sm:$0xff] }
  0xb4   :  { %2720 = vmatpush3.bf16.msra.mxu1 %v2719_v55  ;;  %v382_v55 = vld [vmem:[#allocation6 + $0xa80] sm:$0xff] }
  0xb5   :  { %2722 = vmatprep.subr.bf16.mxu1 %v2721_v20  ;;  %v2739_v20 = vpack.c.bf16 %v349_v54, %v348_v51  ;;  %v2741_v62 = vpack.c.bf16 %v383_v56, %v382_v55  ;;  %v390_v51 = vld [vmem:[#allocation6 + $0xac0] sm:$0xff]  ;;  %v423_v55 = vld [vmem:[#allocation6 + $0xbc8] sm:$0xff] }
  0xb6   :  { %2692 = vmatpush3.bf16.msra.mxu0 %v2691_v3  ;;  %v399_v3 = vld [vmem:[#allocation6 + $0xb08] sm:$0xff]  ;;  %v422_v54 = vld [vmem:[#allocation6 + $0xbc0] sm:$0xff] }
  0xb7   :  { %2694 = vmatprep.subr.bf16.mxu0 %v2693_v5  ;;  %v385_v5 = vld [vmem:[#allocation6 + $0xa98] sm:$0xff]  ;;  %v2775_v13 = vpack.c.bf16 %v399_v3, %v398_v1  ;;  %v392_v1 = vld [vmem:[#allocation6 + $0xad0] sm:$0xff] }
  0xb8   :  { %2724 = vmatpush3.bf16.msra.mxu1 %v2723_v4  ;;  %v384_v4 = vld [vmem:[#allocation6 + $0xa90] sm:$0xff] }
  0xb9   :  { %2726 = vmatprep.subr.bf16.mxu1 %v2725_v9  ;;  %v2743_v9 = vpack.c.bf16 %v367_v0, %v366_v63  ;;  %v2745_v14 = vpack.c.bf16 %v385_v5, %v384_v4  ;;  %v2789_v63 = vpack.c.bf16 %v423_v55, %v422_v54  ;;  %v407_v0 = vld [vmem:[#allocation6 + $0xb48] sm:$0xff]  ;;  %v424_v3 = vld [vmem:[#allocation6 + $0xbd0] sm:$0xff]  ;;  %v425_v4 = vld [vmem:[#allocation6 + $0xbd8] sm:$0xff] }
  0xba   :  { %2696 = vmatpush3.bf16.msra.mxu0 %v2695_v17  ;;  %v400_v17 = vld [vmem:[#allocation6 + $0xb10] sm:$0xff]  ;;  %v462_v54 = vld [vmem:[#allocation6 + $0xd00] sm:$0xff] }
  0xbb   :  { %2698 = vmatprep.subr.bf16.mxu0 %v2697_v19  ;;  %v401_v19 = vld [vmem:[#allocation6 + $0xb18] sm:$0xff] }
  0xbc   :  { %2728 = vmatpush3.bf16.msra.mxu1 %v2727_v18  ;;  %v2777_v18 = vpack.c.bf16 %v417_v8, %v416_v7  ;;  %v2779_v30 = vpack.c.bf16 %v401_v19, %v400_v17  ;;  %v376_v8 = vld [vmem:[#allocation6 + $0xa50] sm:$0xff]  ;;  %v426_v17 = vld [vmem:[#allocation6 + $0xbe0] sm:$0xff] }
  0xbd   :  { %2730 = vmatprep.subr.bf16.mxu1 %v2729_v25  ;;  %v418_v25 = vld [vmem:[#allocation6 + $0xba0] sm:$0xff] }
  0xbe   :  { %2700 = vmatpush3.bf16.msra.mxu0 %v2699_v33  ;;  %v370_v33 = vld [vmem:[#allocation6 + $0xa20] sm:$0xff]  ;;  %v2781_v36 = vpack.c.bf16 %v419_v26, %v418_v25  ;;  %v379_v25 = vld [vmem:[#allocation6 + $0xa68] sm:$0xff] }
  0xbf   :  { %2702 = vmatprep.subr.bf16.mxu0 %v2701_v35  ;;  %v402_v35 = vld [vmem:[#allocation6 + $0xb20] sm:$0xff] }
  0xc0   :  { %2732 = vmatpush3.bf16.msra.mxu1 %v2731_v34  ;;  %v371_v34 = vld [vmem:[#allocation6 + $0xa28] sm:$0xff]  ;;  %v2783_v44 = vpack.c.bf16 %v403_v37, %v402_v35  ;;  %v410_v26 = vld [vmem:[#allocation6 + $0xb60] sm:$0xff] }
  0xc1   :  { %2734 = vmatprep.subr.bf16.mxu1 %v2733_v47  ;;  %v389_v47 = vld [vmem:[#allocation6 + $0xab8] sm:$0xff]  ;;  %v2751_v42 = vpack.c.bf16 %v371_v34, %v370_v33  ;;  %v428_v33 = vld [vmem:[#allocation6 + $0xbf0] sm:$0xff] }
  0xc2   :  { %2704 = vmatpush3.bf16.msra.mxu0 %v2703_v61  ;;  %v2753_v45 = vpack.c.bf16 %v389_v47, %v388_v38  ;;  %v372_v61 = vld [vmem:[#allocation6 + $0xa30] sm:$0xff]  ;;  %v429_v34 = vld [vmem:[#allocation6 + $0xbf8] sm:$0xff] }
  0xc3   :  { %2706 = vmatprep.subr.bf16.mxu0 %v2705_v48  ;;  %v404_v48 = vld [vmem:[#allocation6 + $0xb30] sm:$0xff]  ;;  %v381_v47 = vld [vmem:[#allocation6 + $0xa78] sm:$0xff]  ;;  %v2801_v41 = vpack.c.bf16 %v429_v34, %v428_v33 }
  0xc4   :  { %2736 = vmatpush3.bf16.msra.mxu1 %v2735_v46  ;;  %v373_v46 = vld [vmem:[#allocation6 + $0xa38] sm:$0xff]  ;;  %v2787_v58 = vpack.c.bf16 %v405_v50, %v404_v48  ;;  %v380_v38 = vld [vmem:[#allocation6 + $0xa70] sm:$0xff] }
  0xc5   :  { %2738 = vmatprep.subr.bf16.mxu1 %v2737_v52  ;;  %v391_v52 = vld [vmem:[#allocation6 + $0xac8] sm:$0xff]  ;;  %v2755_v56 = vpack.c.bf16 %v373_v46, %v372_v61  ;;  %v478_v61 = vld [vmem:[#allocation6 + $0xd80] sm:$0xff]  ;;  %v2771_v48 = vpack.c.bf16 %v381_v47, %v380_v38  ;;  %v436_v33 = vld [vmem:[#allocation6 + $0xc30] sm:$0xff] }
  0xc6   :  { %2708 = vmatpush3.bf16.msra.mxu0 %v2707_v60  ;;  %v2757_v59 = vpack.c.bf16 %v391_v52, %v390_v51  ;;  %v374_v60 = vld [vmem:[#allocation6 + $0xa40] sm:$0xff]  ;;  %v479_v46 = vld [vmem:[#allocation6 + $0xd88] sm:$0xff]  ;;  %v437_v34 = vld [vmem:[#allocation6 + $0xc38] sm:$0xff] }
  0xc7   :  { %2742 = vmatprep.subr.bf16.mxu0 %v2741_v62  ;;  %v406_v62 = vld [vmem:[#allocation6 + $0xb40] sm:$0xff]  ;;  %v431_v52 = vld [vmem:[#allocation6 + $0xc08] sm:$0xff]  ;;  %v2837_v55 = vpack.c.bf16 %v479_v46, %v478_v61 }
  0xc8   :  { %2740 = vmatpush3.bf16.msra.mxu1 %v2739_v20  ;;  %v375_v20 = vld [vmem:[#allocation6 + $0xa48] sm:$0xff]  ;;  %v430_v51 = vld [vmem:[#allocation6 + $0xc00] sm:$0xff] }
  0xc9   :  { %2774 = vmatprep.subr.bf16.mxu1 %v2773_v2  ;;  %1349 = vmatmul.mubr.f32.vlgmr.msra.gmra.mrb[8].mxu0 %v631_v6  ;;  %v393_v2 = vld [vmem:[#allocation6 + $0xad8] sm:$0xff]  ;;  %v2759_v5 = vpack.c.bf16 %v375_v20, %v374_v60  ;;  %v2791_v6 = vpack.c.bf16 %v407_v0, %v406_v62  ;;  %v647_v60 = vrot.slane %v3126_v22, %v3101_v27  ;;  %v480_v20 = vld [vmem:[#allocation6 + $0xd90] sm:$0xff]  ;;  %v454_v38 = vld [vmem:[#allocation6 + $0xcc0] sm:$0xff] }
  0xca   :  { %2744 = vmatpush3.bf16.msra.mxu0 %v2743_v9  ;;  %1488 = vmatprep.mubr.f32.mxu0 %v651_v24  ;;  %v2761_v7 = vpack.c.bf16 %v393_v2, %v392_v1  ;;  %v377_v9 = vld [vmem:[#allocation6 + $0xa58] sm:$0xff]  ;;  %v378_v24 = vld [vmem:[#allocation6 + $0xa60] sm:$0xff]  ;;  %v2807_v0 = vpack.c.bf16 %v431_v52, %v430_v51  ;;  %v655_v1 = vrot.slane %v3126_v22, %v3104_v31  ;;  %v455_v47 = vld [vmem:[#allocation6 + $0xcc8] sm:$0xff] }
  0xcb   :  { %1419 = vmatmul.mubr.f32.vlgmr.msra.gmra.mrb[8].mxu1 %v639_v12  ;;  %2746 = vmatprep.subr.bf16.mxu0 %v2745_v14  ;;  %v408_v12 = vld [vmem:[#allocation6 + $0xb50] sm:$0xff]  ;;  %v409_v14 = vld [vmem:[#allocation6 + $0xb58] sm:$0xff]  ;;  %v2763_v19 = vpack.c.bf16 %v377_v9, %v376_v8  ;;  %v2767_v35 = vpack.c.bf16 %v379_v25, %v378_v24  ;;  %v450_v9 = vld [vmem:[#allocation6 + $0xca0] sm:$0xff] }
  0xcc   :  { %2776 = vmatpush3.bf16.msra.mxu1 %v2775_v13  ;;  %1558 = vmatprep.mubr.f32.mxu1 %v659_v28  ;;  %v2793_v13 = vpack.c.bf16 %v425_v4, %v424_v3  ;;  %v2795_v21 = vpack.c.bf16 %v409_v14, %v408_v12  ;;  %v481_v62 = vld [vmem:[#allocation6 + $0xd98] sm:$0xff]  ;;  %v432_v4 = vld [vmem:[#allocation6 + $0xc10] sm:$0xff]  ;;  %v451_v12 = vld [vmem:[#allocation6 + $0xca8] sm:$0xff] }
  0xcd   :  { %2778 = vmatprep.subr.bf16.mxu1 %v2777_v18  ;;  %v427_v18 = vld [vmem:[#allocation6 + $0xbe8] sm:$0xff]  ;;  %v465_v8 = vld [vmem:[#allocation6 + $0xd18] sm:$0xff]  ;;  %v482_v14 = vld [vmem:[#allocation6 + $0xda0] sm:$0xff] }
  0xce   :  { %2748 = vmatpush3.bf16.msra.mxu0 %v2747_v29  ;;  %v2797_v28 = vpack.c.bf16 %v427_v18, %v426_v17  ;;  %v411_v29 = vld [vmem:[#allocation6 + $0xb68] sm:$0xff]  ;;  %v2813_v18 = vpack.c.bf16 %v451_v12, %v450_v9  ;;  %v2845_v24 = vpack.c.bf16 %v483_v15, %v482_v14  ;;  %v438_v61 = vld [vmem:[#allocation6 + $0xc40] sm:$0xff]  ;;  %v456_v51 = vld [vmem:[#allocation6 + $0xcd0] sm:$0xff] }
  0xcf   :  { %2750 = vmatprep.subr.bf16.mxu0 %v2749_v32  ;;  %v397_v32 = vld [vmem:[#allocation6 + $0xaf8] sm:$0xff]  ;;  %v467_v25 = vld [vmem:[#allocation6 + $0xd28] sm:$0xff]  ;;  %v442_v9 = vld [vmem:[#allocation6 + $0xc60] sm:$0xff] }
  0xd0   :  { %2780 = vmatpush3.bf16.msra.mxu1 %v2779_v30  ;;  %v396_v30 = vld [vmem:[#allocation6 + $0xaf0] sm:$0xff]  ;;  %v439_v46 = vld [vmem:[#allocation6 + $0xc48] sm:$0xff]  ;;  %v457_v52 = vld [vmem:[#allocation6 + $0xcd8] sm:$0xff] }
  0xd1   :  { %2782 = vmatprep.subr.bf16.mxu1 %v2781_v36  ;;  %v2799_v36 = vpack.c.bf16 %v411_v29, %v410_v26  ;;  %v2769_v37 = vpack.c.bf16 %v397_v32, %v396_v30  ;;  %v453_v26 = vld [vmem:[#allocation6 + $0xcb8] sm:$0xff]  ;;  %v443_v12 = vld [vmem:[#allocation6 + $0xc68] sm:$0xff] }
  0xd2   :  { %2752 = vmatpush3.bf16.msra.mxu0 %v2751_v42  ;;  %v413_v42 = vld [vmem:[#allocation6 + $0xb78] sm:$0xff]  ;;  %v475_v15 = vld [vmem:[#allocation6 + $0xd68] sm:$0xff] }
  0xd3   :  { %2754 = vmatprep.subr.bf16.mxu0 %v2753_v45  ;;  %v447_v45 = vld [vmem:[#allocation6 + $0xc88] sm:$0xff]  ;;  %v485_v29 = vld [vmem:[#allocation6 + $0xdb8] sm:$0xff] }
  0xd4   :  { %2784 = vmatpush3.bf16.msra.mxu1 %v2783_v44  ;;  %v446_v44 = vld [vmem:[#allocation6 + $0xc80] sm:$0xff] }
  0xd5   :  { %2786 = vmatprep.subr.bf16.mxu1 %v2785_v49  ;;  %v2803_v49 = vpack.c.bf16 %v413_v42, %v412_v40  ;;  %v2805_v50 = vpack.c.bf16 %v447_v45, %v446_v44  ;;  %v486_v40 = vld [vmem:[#allocation6 + $0xdc0] sm:$0xff]  ;;  %v2819_v42 = vpack.c.bf16 %v437_v34, %v436_v33  ;;  %v2821_v45 = vpack.c.bf16 %v455_v47, %v454_v38 }
  0xd6   :  { %2756 = vmatpush3.bf16.msra.mxu0 %v2755_v56  ;;  %v463_v56 = vld [vmem:[#allocation6 + $0xd08] sm:$0xff]  ;;  %v526_v38 = vld [vmem:[#allocation6 + $0xf00] sm:$0xff] }
  0xd7   :  { %2758 = vmatprep.subr.bf16.mxu0 %v2757_v59  ;;  %v449_v59 = vld [vmem:[#allocation6 + $0xc98] sm:$0xff]  ;;  %v2839_v2 = vpack.c.bf16 %v463_v56, %v462_v54  ;;  %v488_v54 = vld [vmem:[#allocation6 + $0xdd0] sm:$0xff]  ;;  %v2823_v56 = vpack.c.bf16 %v439_v46, %v438_v61 }
  0xd8   :  { %2788 = vmatpush3.bf16.msra.mxu1 %v2787_v58  ;;  %v448_v58 = vld [vmem:[#allocation6 + $0xc90] sm:$0xff]  ;;  %v545_v61 = vld [vmem:[#allocation6 + $0xf98] sm:$0xff] }
  0xd9   :  { %2790 = vmatprep.subr.bf16.mxu1 %v2789_v63  ;;  %v3144_v63 = vld [vmem:[#allocation3 + $0x18] sm:$0xff]  ;;  %v2809_v3 = vpack.c.bf16 %v449_v59, %v448_v58  ;;  %v2825_v59 = vpack.c.bf16 %v457_v52, %v456_v51  ;;  %v496_v51 = vld [vmem:[#allocation6 + $0xe10] sm:$0xff] }
  0xda   :  { %2760 = vmatpush3.bf16.msra.mxu0 %v2759_v5  ;;  %v433_v5 = vld [vmem:[#allocation6 + $0xc18] sm:$0xff]  ;;  %v675_v22 = vrot.slane %v3144_v63, %v3072_v11 }
  0xdb   :  { %2762 = vmatprep.subr.bf16.mxu0 %v2761_v7  ;;  %v2841_v7 = vpack.c.bf16 %v481_v62, %v480_v20  ;;  %v2811_v16 = vpack.c.bf16 %v433_v5, %v432_v4  ;;  %v441_v20 = vld [vmem:[#allocation6 + $0xc58] sm:$0xff]  ;;  %v472_v62 = vld [vmem:[#allocation6 + $0xd50] sm:$0xff]  ;;  %v490_v4 = vld [vmem:[#allocation6 + $0xde0] sm:$0xff] }
  0xdc   :  { %2792 = vmatpush3.bf16.msra.mxu1 %v2791_v6  ;;  %v464_v6 = vld [vmem:[#allocation6 + $0xd10] sm:$0xff]  ;;  %v491_v5 = vld [vmem:[#allocation6 + $0xde8] sm:$0xff]  ;;  %v497_v52 = vld [vmem:[#allocation6 + $0xe18] sm:$0xff] }
  0xdd   :  { %2794 = vmatprep.subr.bf16.mxu1 %v2793_v13  ;;  %v667_v13 = vrot.slane %v3144_v63, %v3069_v10  ;;  %v2843_v17 = vpack.c.bf16 %v465_v8, %v464_v6  ;;  %v452_v10 = vld [vmem:[#allocation6 + $0xcb0] sm:$0xff]  ;;  %v2861_v14 = vpack.c.bf16 %v491_v5, %v490_v4  ;;  %v530_v4 = vld [vmem:[#allocation6 + $0xf20] sm:$0xff] }
  0xde   :  { %2764 = vmatpush3.bf16.msra.mxu0 %v2763_v19  ;;  %v434_v19 = vld [vmem:[#allocation6 + $0xc20] sm:$0xff]  ;;  %v2817_v32 = vpack.c.bf16 %v453_v26, %v452_v10  ;;  %v476_v10 = vld [vmem:[#allocation6 + $0xd70] sm:$0xff] }
  0xdf   :  { %2766 = vmatprep.subr.bf16.mxu0 %v2765_v23  ;;  %v466_v23 = vld [vmem:[#allocation6 + $0xd20] sm:$0xff] }
  0xe0   :  { %2796 = vmatpush3.bf16.msra.mxu1 %v2795_v21  ;;  %v435_v21 = vld [vmem:[#allocation6 + $0xc28] sm:$0xff]  ;;  %v2847_v30 = vpack.c.bf16 %v467_v25, %v466_v23  ;;  %v445_v25 = vld [vmem:[#allocation6 + $0xc78] sm:$0xff] }
  0xe1   :  { %2798 = vmatprep.subr.bf16.mxu1 %v2797_v28  ;;  %v484_v28 = vld [vmem:[#allocation6 + $0xdb0] sm:$0xff]  ;;  %v2815_v11 = vpack.c.bf16 %v435_v21, %v434_v19  ;;  %v2831_v19 = vpack.c.bf16 %v443_v12, %v442_v9  ;;  %v549_v9 = vld [vmem:[#allocation6 + $0xfb8] sm:$0xff] }
  0xe2   :  { %2768 = vmatpush3.bf16.msra.mxu0 %v2767_v35  ;;  %v468_v35 = vld [vmem:[#allocation6 + $0xd30] sm:$0xff] }
  0xe3   :  { %2770 = vmatprep.subr.bf16.mxu0 %v2769_v37  ;;  %v469_v37 = vld [vmem:[#allocation6 + $0xd38] sm:$0xff] }
  0xe4   :  { %2800 = vmatpush3.bf16.msra.mxu1 %v2799_v36  ;;  %v2849_v36 = vpack.c.bf16 %v485_v29, %v484_v28  ;;  %v2851_v44 = vpack.c.bf16 %v469_v37, %v468_v35  ;;  %v477_v28 = vld [vmem:[#allocation6 + $0xd78] sm:$0xff]  ;;  %v510_v29 = vld [vmem:[#allocation6 + $0xe80] sm:$0xff]  ;;  %v495_v37 = vld [vmem:[#allocation6 + $0xe08] sm:$0xff] }
  0xe5   :  { %2802 = vmatprep.subr.bf16.mxu1 %v2801_v41  ;;  %v487_v41 = vld [vmem:[#allocation6 + $0xdc8] sm:$0xff]  ;;  %v2867_v34 = vpack.c.bf16 %v477_v28, %v476_v10 }
  0xe6   :  { %2772 = vmatpush3.bf16.msra.mxu0 %v2771_v48  ;;  %v470_v48 = vld [vmem:[#allocation6 + $0xd40] sm:$0xff]  ;;  %v503_v28 = vld [vmem:[#allocation6 + $0xe48] sm:$0xff] }
  0xe7   :  { %2806 = vmatprep.subr.bf16.mxu0 %v2805_v50  ;;  %v471_v50 = vld [vmem:[#allocation6 + $0xd48] sm:$0xff] }
  0xe8   :  { %2804 = vmatpush3.bf16.msra.mxu1 %v2803_v49  ;;  %v2853_v49 = vpack.c.bf16 %v487_v41, %v486_v40  ;;  %v2855_v58 = vpack.c.bf16 %v471_v50, %v470_v48  ;;  %v527_v40 = vld [vmem:[#allocation6 + $0xf08] sm:$0xff]  ;;  %v512_v41 = vld [vmem:[#allocation6 + $0xe90] sm:$0xff]  ;;  %v671_v48 = vrot.slane %v3144_v63, %v3084_v43  ;;  %v691_v43 = vrot.slane %v3144_v63, %v3092_v57 }
  0xe9   :  { %2838 = vmatprep.subr.bf16.mxu1 %v2837_v55  ;;  %1489 = vmatmul.mubr.f32.vlgmr.msra.gmra.mrb[10].mxu0 %v647_v60  ;;  %v489_v55 = vld [vmem:[#allocation6 + $0xdd8] sm:$0xff]  ;;  %v440_v60 = vld [vmem:[#allocation6 + $0xc50] sm:$0xff] }
  0xea   :  { %2808 = vmatpush3.bf16.msra.mxu0 %v2807_v0  ;;  %1628 = vmatprep.mubr.f32.mxu0 %v667_v13  ;;  %v2857_v0 = vpack.c.bf16 %v489_v55, %v488_v54  ;;  %v2827_v6 = vpack.c.bf16 %v441_v20, %v440_v60  ;;  %v474_v13 = vld [vmem:[#allocation6 + $0xd60] sm:$0xff]  ;;  %v528_v54 = vld [vmem:[#allocation6 + $0xf10] sm:$0xff]  ;;  %v547_v20 = vld [vmem:[#allocation6 + $0xfa8] sm:$0xff] }
  0xeb   :  { %1559 = vmatmul.mubr.f32.vlgmr.msra.gmra.mrb[10].mxu1 %v655_v1  ;;  %2810 = vmatprep.subr.bf16.mxu0 %v2809_v3  ;;  %v473_v1 = vld [vmem:[#allocation6 + $0xd58] sm:$0xff]  ;;  %v459_v3 = vld [vmem:[#allocation6 + $0xce8] sm:$0xff]  ;;  %v2863_v21 = vpack.c.bf16 %v475_v15, %v474_v13  ;;  %v546_v60 = vld [vmem:[#allocation6 + $0xfa0] sm:$0xff] }
  0xec   :  { %2840 = vmatpush3.bf16.msra.mxu1 %v2839_v2  ;;  %1698 = vmatprep.mubr.f32.mxu1 %v675_v22  ;;  %v458_v2 = vld [vmem:[#allocation6 + $0xce0] sm:$0xff]  ;;  %v460_v22 = vld [vmem:[#allocation6 + $0xcf0] sm:$0xff]  ;;  %v2909_v5 = vpack.c.bf16 %v547_v20, %v546_v60  ;;  %v501_v15 = vld [vmem:[#allocation6 + $0xe38] sm:$0xff]  ;;  %v559_v20 = vstv %s3181_s2  ;;  %s3014_s2 = smov [#allocation8]  }
  0xed   :  { %2842 = vmatprep.subr.bf16.mxu1 %v2841_v7  ;;  %v2859_v7 = vpack.c.bf16 %v473_v1, %v472_v62  ;;  %v2829_v8 = vpack.c.bf16 %v459_v3, %v458_v2  ;;  %v2875_v62 = vpack.c.bf16 %v497_v52, %v496_v51  ;;  %v498_v2 = vld [vmem:[#allocation6 + $0xe20] sm:$0xff]  ;;  %v499_v3 = vld [vmem:[#allocation6 + $0xe28] sm:$0xff]  ;;  %v525_v60 = vld [vmem:[#allocation6 + $0xef8] sm:$0xff]  ;;  %s1851_s11 = sshll.u32 %s3014_s2, 4  ;;  %s1852_s11 = int_to_ptr.vmem [resolvable:$true] %s1851_s11 }
  0xee   :  { %2812 = vmatpush3.bf16.msra.mxu0 %v2811_v16  ;;  %v461_v16 = vld [vmem:[#allocation6 + $0xcf8] sm:$0xff]  ;;  %v2879_v57 = vpack.c.bf16 %v499_v3, %v498_v2  ;;  %v506_v52 = vld [vmem:[#allocation6 + $0xe60] sm:$0xff]  ;;  %s2982_s12 = scalar_lea.vmem %s1852_s11, 16  ;;  %s2986_s13 = scalar_lea.vmem %s1852_s11, 32 }
  0xef   :  { %2814 = vmatprep.subr.bf16.mxu0 %v2813_v18  ;;  %v493_v18 = vld [vmem:[#allocation6 + $0xdf8] sm:$0xff]  ;;  %v2833_v23 = vpack.c.bf16 %v461_v16, %v460_v22  ;;  %v532_v22 = vld [vmem:[#allocation6 + $0xf30] sm:$0xff]  ;;  %p2983_p2 = scmp.ne.s32.totalorder %s1852_s11, %s2982_s12  ;;  %p2987_p3 = scmp.lt.s32.totalorder %s1852_s11, %s1852_s11 }
  0xf0   :  { %2844 = vmatpush3.bf16.msra.mxu1 %v2843_v17  ;;  %v492_v17 = vld [vmem:[#allocation6 + $0xdf0] sm:$0xff]  ;;  %p2988_p4 = scmp.lt.s32.totalorder %s2986_s13, %s2982_s12 }
  0xf1   :  { %2846 = vmatprep.subr.bf16.mxu1 %v2845_v24  ;;  %v444_v24 = vld [vmem:[#allocation6 + $0xc70] sm:$0xff]  ;;  %v2865_v26 = vpack.c.bf16 %v493_v18, %v492_v17  ;;  %v533_v17 = vld [vmem:[#allocation6 + $0xf38] sm:$0xff]  ;;  %v518_v18 = vld [vmem:[#allocation6 + $0xec0] sm:$0xff] }
  0xf2   :  { %2816 = vmatpush3.bf16.msra.mxu0 %v2815_v11  ;;  %v511_v11 = vld [vmem:[#allocation6 + $0xe88] sm:$0xff]  ;;  %v2835_v33 = vpack.c.bf16 %v445_v25, %v444_v24  ;;  %v2915_v25 = vpack.c.bf16 %v533_v17, %v532_v22  ;;  %v687_v17 = vrot.slane %v3144_v63, %v3104_v31  ;;  %p2989_p5 = por %p2988_p4, %p2987_p3 }
  0xf3   :  { %2818 = vmatprep.subr.bf16.mxu0 %v2817_v32  ;;  %v543_v32 = vld [vmem:[#allocation6 + $0xf88] sm:$0xff]  ;;  %v2869_v35 = vpack.c.bf16 %v511_v11, %v510_v29  ;;  %v534_v29 = vld [vmem:[#allocation6 + $0xf40] sm:$0xff] }
  0xf4   :  { %2848 = vmatpush3.bf16.msra.mxu1 %v2847_v30  ;;  %v542_v30 = vld [vmem:[#allocation6 + $0xf80] sm:$0xff]  ;;  %p2990_p6 = pnand %p2989_p5, %p2983_p2 }
  0xf5   :  { %2850 = vmatprep.subr.bf16.mxu1 %v2849_v36  ;;  %v494_v36 = vld [vmem:[#allocation6 + $0xe00] sm:$0xff]  ;;  %v2901_v47 = vpack.c.bf16 %v543_v32, %v542_v30  ;;  %v535_v30 = vld [vmem:[#allocation6 + $0xf48] sm:$0xff]  ;;  %v520_v32 = vld [vmem:[#allocation6 + $0xed0] sm:$0xff] }
  0xf6   :  { %2820 = vmatpush3.bf16.msra.mxu0 %v2819_v42  ;;  %v513_v42 = vld [vmem:[#allocation6 + $0xe98] sm:$0xff]  ;;  %v2871_v46 = vpack.c.bf16 %v495_v37, %v494_v36  ;;  %v2919_v37 = vpack.c.bf16 %v535_v30, %v534_v29 }
  0xf7   :  { %2822 = vmatprep.subr.bf16.mxu0 %v2821_v45  ;;  %v544_v45 = vld [vmem:[#allocation6 + $0xf90] sm:$0xff]  ;;  %v2873_v50 = vpack.c.bf16 %v513_v42, %v512_v41 }
  0xf8   :  { %2852 = vmatpush3.bf16.msra.mxu1 %v2851_v44  ;;  %v663_v44 = vrot.slane %v3144_v63, %v3081_v39  ;;  %v2905_v55 = vpack.c.bf16 %v545_v61, %v544_v45  ;;  %v683_v39 = vrot.slane %v3144_v63, %v3087_v53  ;;  %v516_v53 = vld [vmem:[#allocation6 + $0xeb0] sm:$0xff]  ;;  %v522_v45 = vld [vmem:[#allocation6 + $0xee0] sm:$0xff]  ;;  %v523_v61 = vld [vmem:[#allocation6 + $0xee8] sm:$0xff] }
  0xf9   :  { %2854 = vmatprep.subr.bf16.mxu1 %v2853_v49  ;;  %v2903_v49 = vpack.c.bf16 %v527_v40, %v526_v38  ;;  %v505_v40 = vld [vmem:[#allocation6 + $0xe58] sm:$0xff]  ;;  %v536_v41 = vld [vmem:[#allocation6 + $0xf50] sm:$0xff]  ;;  %v2893_v51 = vpack.c.bf16 %v523_v61, %v522_v45 }
  0xfa   :  { %2824 = vmatpush3.bf16.msra.mxu0 %v2823_v56  ;;  %v529_v56 = vld [vmem:[#allocation6 + $0xf18] sm:$0xff] }
  0xfb   :  { %2826 = vmatprep.subr.bf16.mxu0 %v2825_v59  ;;  %v515_v59 = vld [vmem:[#allocation6 + $0xea8] sm:$0xff] }
  0xfc   :  { %2856 = vmatpush3.bf16.msra.mxu1 %v2855_v58  ;;  %v514_v58 = vld [vmem:[#allocation6 + $0xea0] sm:$0xff] }
  0xfd   :  { %2858 = vmatprep.subr.bf16.mxu1 %v2857_v0  ;;  %v2907_v0 = vpack.c.bf16 %v529_v56, %v528_v54  ;;  %v2877_v1 = vpack.c.bf16 %v515_v59, %v514_v58  ;;  %v507_v54 = vld [vmem:[#allocation6 + $0xe68] sm:$0xff] }
  0xfe   :  { %2828 = vmatpush3.bf16.msra.mxu0 %v2827_v6  ;;  %v531_v6 = vld [vmem:[#allocation6 + $0xf28] sm:$0xff] }
  0xff   :  { %2830 = vmatprep.subr.bf16.mxu0 %v2829_v8  ;;  %v548_v8 = vld [vmem:[#allocation6 + $0xfb0] sm:$0xff]  ;;  %v2911_v12 = vpack.c.bf16 %v531_v6, %v530_v4  ;;  %v539_v59 = vld [vmem:[#allocation6 + $0xf68] sm:$0xff]  ;;  %v2895_v4 = vpack.c.bf16 %v507_v54, %v506_v52 }
 0x100   :  { %2860 = vmatpush3.bf16.msra.mxu1 %v2859_v7  ;;  %v517_v7 = vld [vmem:[#allocation6 + $0xeb8] sm:$0xff]  ;;  %v2913_v16 = vpack.c.bf16 %v549_v9, %v548_v8 }
 0x101   :  { %2862 = vmatprep.subr.bf16.mxu1 %v2861_v14  ;;  %v2881_v13 = vpack.c.bf16 %v517_v7, %v516_v53  ;;  %v500_v14 = vld [vmem:[#allocation6 + $0xe30] sm:$0xff]  ;;  %v509_v8 = vld [vmem:[#allocation6 + $0xe78] sm:$0xff] }
 0x102   :  { %2832 = vmatpush3.bf16.msra.mxu0 %v2831_v19  ;;  %v519_v19 = vld [vmem:[#allocation6 + $0xec8] sm:$0xff]  ;;  %v2883_v24 = vpack.c.bf16 %v501_v15, %v500_v14  ;;  %v508_v7 = vld [vmem:[#allocation6 + $0xe70] sm:$0xff] }
 0x103   :  { %2834 = vmatprep.subr.bf16.mxu0 %v2833_v23  ;;  %v551_v23 = vld [vmem:[#allocation6 + $0xfc8] sm:$0xff]  ;;  %v2885_v10 = vpack.c.bf16 %v519_v19, %v518_v18  ;;  %v2899_v15 = vpack.c.bf16 %v509_v8, %v508_v7 }
 0x104   :  { %2864 = vmatpush3.bf16.msra.mxu1 %v2863_v21  ;;  %v550_v21 = vld [vmem:[#allocation6 + $0xfc0] sm:$0xff] }
 0x105   :  { %2866 = vmatprep.subr.bf16.mxu1 %v2865_v26  ;;  %v502_v26 = vld [vmem:[#allocation6 + $0xe40] sm:$0xff]  ;;  %v2917_v11 = vpack.c.bf16 %v551_v23, %v550_v21 }
 0x106   :  { %2836 = vmatpush3.bf16.msra.mxu0 %v2835_v33  ;;  %v521_v33 = vld [vmem:[#allocation6 + $0xed8] sm:$0xff]  ;;  %v2887_v36 = vpack.c.bf16 %v503_v28, %v502_v26 }
 0x107   :  { %2870 = vmatprep.subr.bf16.mxu0 %v2869_v35  ;;  %v553_v35 = vld [vmem:[#allocation6 + $0xfd8] sm:$0xff]  ;;  %v2889_v38 = vpack.c.bf16 %v521_v33, %v520_v32 }
 0x108   :  { %2868 = vmatpush3.bf16.msra.mxu1 %v2867_v34  ;;  %v552_v34 = vld [vmem:[#allocation6 + $0xfd0] sm:$0xff] }
 0x109   :  { %2902 = vmatprep.subr.bf16.mxu1 %v2901_v47  ;;  %1629 = vmatmul.mubr.f32.vlgmr.msra.gmra.mrb[12].mxu0 %v663_v44  ;;  %v504_v47 = vld [vmem:[#allocation6 + $0xe50] sm:$0xff]  ;;  %v2921_v42 = vpack.c.bf16 %v553_v35, %v552_v34  ;;  %v537_v44 = vld [vmem:[#allocation6 + $0xf58] sm:$0xff] }
 0x10a   :  { %2872 = vmatpush3.bf16.msra.mxu0 %v2871_v46  ;;  %1768 = vmatprep.mubr.f32.mxu0 %v683_v39  ;;  %v554_v46 = vld [vmem:[#allocation6 + $0xfe0] sm:$0xff]  ;;  %v524_v39 = vld [vmem:[#allocation6 + $0xef0] sm:$0xff] }
 0x10b   :  { %1699 = vmatmul.mubr.f32.vlgmr.msra.gmra.mrb[12].mxu1 %v671_v48  ;;  %2874 = vmatprep.subr.bf16.mxu0 %v2873_v50  ;;  %v555_v48 = vld [vmem:[#allocation6 + $0xfe8] sm:$0xff]  ;;  %v2923_v50 = vpack.c.bf16 %v537_v44, %v536_v41  ;;  %v2897_v53 = vpack.c.bf16 %v525_v60, %v524_v39 }
 0x10c   :  { %2904 = vmatpush3.bf16.msra.mxu1 %v2903_v49  ;;  %1838 = vmatprep.mubr.f32.mxu1 %v691_v43  ;;  %v2891_v49 = vpack.c.bf16 %v505_v40, %v504_v47  ;;  %v2925_v58 = vpack.c.bf16 %v555_v48, %v554_v46 }
 0x10d   :  { %2906 = vmatprep.subr.bf16.mxu1 %v2905_v55  ;;  %v538_v55 = vld [vmem:[#allocation6 + $0xf60] sm:$0xff] }
 0x10e   :  { %2876 = vmatpush3.bf16.msra.mxu0 %v2875_v62  ;;  %v2927_v6 = vpack.c.bf16 %v539_v59, %v538_v55 }
 0x10f   :  { %2878 = vmatprep.subr.bf16.mxu0 %v2877_v1  ;;  %v557_v1 = vld [vmem:[#allocation6 + $0xff8] sm:$0xff] }
 0x110   :  { %2908 = vmatpush3.bf16.msra.mxu1 %v2907_v0  ;;  %v556_v0 = vld [vmem:[#allocation6 + $0xff0] sm:$0xff] }
 0x111   :  { %2910 = vmatprep.subr.bf16.mxu1 %v2909_v5 }
 0x112   :  { %2880 = vmatpush3.bf16.msra.mxu0 %v2879_v57  ;;  %v2929_v57 = vpack.c.bf16 %v557_v1, %v556_v0 }
 0x113   :  { %2882 = vmatprep.subr.bf16.mxu0 %v2881_v13  ;;  %v541_v13 = vld [vmem:[#allocation6 + $0xf78] sm:$0xff] }
 0x114   :  { %2912 = vmatpush3.bf16.msra.mxu1 %v2911_v12  ;;  %v540_v12 = vld [vmem:[#allocation6 + $0xf70] sm:$0xff] }
 0x115   :  { %2914 = vmatprep.subr.bf16.mxu1 %v2913_v16  ;;  %v2931_v22 = vpack.c.bf16 %v541_v13, %v540_v12  ;;  %v679_v16 = vrot.slane %v3144_v63, %v3101_v27 }
 0x116   :  { %2884 = vmatpush3.bf16.msra.mxu0 %v2883_v24 }
 0x117   :  { %2886 = vmatprep.subr.bf16.mxu0 %v2885_v10 }
 0x118   :  { %2916 = vmatpush3.bf16.msra.mxu1 %v2915_v25 }
 0x119   :  { %2918 = vmatprep.subr.bf16.mxu1 %v2917_v11 }
 0x11a   :  { %2888 = vmatpush3.bf16.msra.mxu0 %v2887_v36 }
 0x11b   :  { %2890 = vmatprep.subr.bf16.mxu0 %v2889_v38 }
 0x11c   :  { %2920 = vmatpush3.bf16.msra.mxu1 %v2919_v37  ;;  %v1893_v56 = vpop.f32.mrb[0].mxu0 }
 0x11d   :  { %2922 = vmatprep.subr.bf16.mxu1 %v2921_v42  ;;  %v1894_v43 = vpop.f32.mrb[1].mxu0 }
 0x11e   :  { %v1928_v62 = vpop.f32.mrb[0].mxu1  ;;  %v1895_v2 = vadd.f32 %v1894_v43, %v1893_v56  ;;  %2892 = vmatpush3.bf16.msra.mxu0 %v2891_v49 }
 0x11f   :  { %v1929_v3 = vpop.f32.mrb[1].mxu1  ;;  %2894 = vmatprep.subr.bf16.mxu0 %v2893_v51 }
 0x120   :  { %v1930_v5 = vadd.f32 %v1929_v3, %v1928_v62  ;;  %2924 = vmatpush3.bf16.msra.mxu1 %v2923_v50  ;;  %v791_v9 = vadd.f32 %v1895_v2, %v559_v20 }
 0x121   :  { %2926 = vmatprep.subr.bf16.mxu1 %v2925_v58 }
 0x122   :  { %v861_v14 = vadd.f32 %v1930_v5, %v791_v9  ;;  %2896 = vmatpush3.bf16.msra.mxu0 %v2895_v4 }
 0x123   :  { %2898 = vmatprep.subr.bf16.mxu0 %v2897_v53 }
 0x124   :  { %2928 = vmatpush3.bf16.msra.mxu1 %v2927_v6 }
 0x125   :  { %2930 = vmatprep.subr.bf16.mxu1 %v2929_v57 }
 0x126   :  { %2900 = vmatpush3.bf16.msra.mxu0 %v2899_v15 }
 0x128   :  { %2932 = vmatpush3.bf16.msra.mxu1 %v2931_v22 }
 0x129   :  { %1769 = vmatmul.mubr.f32.vlgmr.msra.gmra.mrb[14].mxu0 %v679_v16 }
 0x12b   :  { %1839 = vmatmul.mubr.f32.vlgmr.msra.gmra.mrb[14].mxu1 %v687_v17 }
 0x13c   :  { %v1963_v18 = vpop.f32.mrb[2].mxu0 }
 0x13d   :  { %v1964_v19 = vpop.f32.mrb[3].mxu0 }
 0x13e   :  { %v1998_v21 = vpop.f32.mrb[2].mxu1  ;;  %v1965_v23 = vadd.f32 %v1964_v19, %v1963_v18 }
 0x13f   :  { %v1999_v24 = vpop.f32.mrb[3].mxu1 }
 0x140   :  { %v2000_v25 = vadd.f32 %v1999_v24, %v1998_v21  ;;  %v931_v10 = vadd.f32 %v1965_v23, %v861_v14 }
 0x142   :  { %v1001_v26 = vadd.f32 %v2000_v25, %v931_v10 }
 0x15c   :  { %v2033_v28 = vpop.f32.mrb[4].mxu0 }
 0x15d   :  { %v2034_v29 = vpop.f32.mrb[5].mxu0 }
 0x15e   :  { %v2068_v11 = vpop.f32.mrb[4].mxu1  ;;  %v2035_v30 = vadd.f32 %v2034_v29, %v2033_v28 }
 0x15f   :  { %v2069_v27 = vpop.f32.mrb[5].mxu1 }
 0x160   :  { %v2070_v32 = vadd.f32 %v2069_v27, %v2068_v11  ;;  %v1071_v33 = vadd.f32 %v2035_v30, %v1001_v26 }
 0x162   :  { %v1141_v34 = vadd.f32 %v2070_v32, %v1071_v33 }
 0x17c   :  { %v2103_v31 = vpop.f32.mrb[6].mxu0 }
 0x17d   :  { %v2104_v63 = vpop.f32.mrb[7].mxu0 }
 0x17e   :  { %v2138_v35 = vpop.f32.mrb[6].mxu1  ;;  %v2105_v36 = vadd.f32 %v2104_v63, %v2103_v31 }
 0x17f   :  { %v2139_v37 = vpop.f32.mrb[7].mxu1 }
 0x180   :  { %v2140_v38 = vadd.f32 %v2139_v37, %v2138_v35  ;;  %v1211_v47 = vadd.f32 %v2105_v36, %v1141_v34 }
 0x182   :  { %v1281_v40 = vadd.f32 %v2140_v38, %v1211_v47 }
 0x19c   :  { %v2173_v41 = vpop.f32.mrb[8].mxu0 }
 0x19d   :  { %v2174_v42 = vpop.f32.mrb[9].mxu0 }
 0x19e   :  { %v2208_v44 = vpop.f32.mrb[8].mxu1  ;;  %v2175_v45 = vadd.f32 %v2174_v42, %v2173_v41 }
 0x19f   :  { %v2209_v61 = vpop.f32.mrb[9].mxu1 }
 0x1a0   :  { %v2210_v46 = vadd.f32 %v2209_v61, %v2208_v44  ;;  %v1351_v48 = vadd.f32 %v2175_v45, %v1281_v40 }
 0x1a2   :  { %v1421_v49 = vadd.f32 %v2210_v46, %v1351_v48 }
 0x1bc   :  { %v2243_v50 = vpop.f32.mrb[10].mxu0 }
 0x1bd   :  { %v2244_v51 = vpop.f32.mrb[11].mxu0 }
 0x1be   :  { %v2278_v52 = vpop.f32.mrb[10].mxu1  ;;  %v2245_v54 = vadd.f32 %v2244_v51, %v2243_v50 }
 0x1bf   :  { %v2279_v55 = vpop.f32.mrb[11].mxu1 }
 0x1c0   :  { %v2280_v56 = vadd.f32 %v2279_v55, %v2278_v52  ;;  %v1491_v58 = vadd.f32 %v2245_v54, %v1421_v49 }
 0x1c2   :  { %v1561_v59 = vadd.f32 %v2280_v56, %v1491_v58 }
 0x1dc   :  { %v2313_v39 = vpop.f32.mrb[12].mxu0 }
 0x1dd   :  { %v2314_v60 = vpop.f32.mrb[13].mxu0 }
 0x1de   :  { %v2348_v20 = vpop.f32.mrb[12].mxu1  ;;  %v2315_v43 = vadd.f32 %v2314_v60, %v2313_v39 }
 0x1df   :  { %v2349_v62 = vpop.f32.mrb[13].mxu1 }
 0x1e0   :  { %v2350_v0 = vadd.f32 %v2349_v62, %v2348_v20  ;;  %v1631_v1 = vadd.f32 %v2315_v43, %v1561_v59 }
 0x1e2   :  { %v1701_v2 = vadd.f32 %v2350_v0, %v1631_v1 }
 0x1fc   :  { %v2383_v3 = vpop.f32.mrb[14].mxu0 }
 0x1fd   :  { %v2384_v4 = vpop.f32.mrb[15].mxu0 }
 0x1fe   :  { %v2418_v5 = vpop.f32.mrb[14].mxu1  ;;  %v2385_v6 = vadd.f32 %v2384_v4, %v2383_v3 }
 0x1ff   :  { %v2419_v53 = vpop.f32.mrb[15].mxu1 }
 0x200   :  { %v2420_v7 = vadd.f32 %v2419_v53, %v2418_v5  ;;  %v1771_v8 = vadd.f32 %v2385_v6, %v1701_v2 }
 0x202   :  { %v1841_v9 = vadd.f32 %v2420_v7, %v1771_v8 }
 0x204   :  { %1844 = vst [vmem:[#allocation8] sm:$0x1] %v1841_v9 }
 0x205   :  { %2993 = shalt.err (!%p2990_p6)
}
 0x206   :  { %s2994_s16 = scalar_lea.hbm %s3182_s3, 16 }
 0x207   :  { %p2995_p7 = scmp.ne.s32.totalorder %s3182_s3, %s2994_s16  ;;  %p2998_p8 = scmp.lt.u32.totalorder %s2994_s16, %s3182_s3 }
 0x209   :  { %p3000_p9 = pnand %p2998_p8, %p2995_p7 }
 0x20b   :  { %3003 = shalt.err (!%p3000_p9)
}
 0x20c   :  { %1854 = dma.vmem_to_hbm [thread:$0]  %s1852_s11, 16, %s3182_s3, [#allocation5]  }
 0x20d   :  { %3008 = dma.done.wait [#allocation5], 16  }
 0x20e   :  { %3009 = vsyncadd [#allocation5], 4294967280 }
 0x20f   :  { %1858 = vsyncpa [#allocation4], 1 }
 0x210   :  { %1859 = vsyncpa [#allocation7], 1 }
 0x211   :  { %1860 = vsyncpa [#allocation5], 1 }

</bundles_post_ra>
